<compile_context>
chip_gen: v5e
topology: v5e:2x2
jax: 0.10.0
libtpu: 0.0.40
codegen_flags: <defaults>
</compile_context>

<pallas_src>
import functools
import math

import jax
import jax.numpy as jnp
import numpy as np
from jax.experimental import pallas as pl
from jax.experimental.pallas import tpu as pltpu

EPS = 1e-5


# ----------------------------------------------------------------------------
# The fused, batch-tiled VGG kernel (B images per grid step)
# ----------------------------------------------------------------------------
def _vgg_kernel(x_ref, wb1_ref, sh1_ref, sel1e_ref, sel1o_ref, col1e_ref, col1o_ref,
                wb2_ref, sh2_ref, sel2e_ref, sel2o_ref, col2e_ref, col2o_ref,
                wd_ref, shd_ref, wc_ref, bc_ref, out_ref, p1_ref):
    """conv3x3+BN+ReLU -> pool -> conv3x3+BN+ReLU -> pool -> Linear+BN1d -> ReLU
    -> Linear for a whole batch tile, entirely in VMEM."""
    f32, bf16 = jnp.float32, jnp.bfloat16
    R1 = x_ref.shape[1]          # padded conv1 slab rows  = B*(h1+1)+1
    M1 = R1 - 2                  # computed conv1 rows
    R2 = p1_ref.shape[0]         # padded conv2 slab rows  = B*(h2+1)+1
    M2 = R2 - 2                  # computed conv2 rows
    B = out_ref.shape[1]         # batch tile
    h3 = wd_ref.shape[0]

    # ---- conv1 (3x3, pad folded into slab rows / banded weights) + bias/BN + ReLU ---
    acc = jnp.dot(x_ref[0, 0:M1, :].astype(bf16), wb1_ref[0, :, :],
                  preferred_element_type=f32)
    for kh in (1, 2):
        acc = acc + jnp.dot(x_ref[0, kh:kh + M1, :].astype(bf16), wb1_ref[kh, :, :],
                            preferred_element_type=f32)
    y1 = jnp.maximum(acc + sh1_ref[...], 0.0).astype(bf16)        # (M1, w1*c1) bf16

    # ---- 2x2 max pool #1 via precomputed one-hot bf16 selectors (MXU) ----------------
    # Row selectors also produce the zero pad rows the next conv needs.
    hmax = jnp.maximum(jnp.dot(sel1e_ref[...], y1, preferred_element_type=f32),
                       jnp.dot(sel1o_ref[...], y1, preferred_element_type=f32)
                       ).astype(bf16)                              # (R2, w1*c1)
    p1 = jnp.maximum(jnp.dot(hmax, col1e_ref[...], preferred_element_type=f32),
                     jnp.dot(hmax, col1o_ref[...], preferred_element_type=f32))
    p1_ref[...] = p1                                               # (R2, w2*c1) f32 slab

    # ---- conv2 (3x3, pad=1) + bias/BN + ReLU ------------------------------------------
    acc = jnp.dot(p1_ref[0:M2, :].astype(bf16), wb2_ref[0, :, :],
                  preferred_element_type=f32)
    for kh in (1, 2):
        acc = acc + jnp.dot(p1_ref[kh:kh + M2, :].astype(bf16), wb2_ref[kh, :, :],
                            preferred_element_type=f32)
    y2 = jnp.maximum(acc + sh2_ref[...], 0.0).astype(bf16)        # (M2, w2*c2) bf16

    # ---- 2x2 max pool #2 -> rows ordered (h3-major, batch-minor): row = hh*B + b ------
    hmax2 = jnp.maximum(jnp.dot(sel2e_ref[...], y2, preferred_element_type=f32),
                        jnp.dot(sel2o_ref[...], y2, preferred_element_type=f32)
                        ).astype(bf16)                             # (h3*B, w2*c2)
    p2 = jnp.maximum(jnp.dot(hmax2, col2e_ref[...], preferred_element_type=f32),
                     jnp.dot(hmax2, col2o_ref[...], preferred_element_type=f32))
    # p2: (h3*B, w3*c2) f32; slices below are sublane-aligned (multiples of 8 when B=8)

    # ---- dense (Dropout = eval identity) + BatchNorm1d (folded) + ReLU ----------------
    hid = jnp.dot(p2[0:B, :].astype(bf16), wd_ref[0, :, :], preferred_element_type=f32)
    for hh in range(1, h3):
        hid = hid + jnp.dot(p2[hh * B:(hh + 1) * B, :].astype(bf16), wd_ref[hh, :, :],
                            preferred_element_type=f32)
    hid = jnp.maximum(hid + shd_ref[...], 0.0).astype(bf16)       # (B, hidden)

    # ---- classifier Linear (output padded to 128 lanes -> lane-dense store) -----------
    out_ref[0, :, :] = (jnp.dot(hid, wc_ref[...], preferred_element_type=f32)
                        + bc_ref[...]).astype(out_ref.dtype)


_PACKED_ORDER = ("wb1", "sh1", "sel1e", "sel1o", "col1e", "col1o",
                 "wb2", "sh2", "sel2e", "sel2o", "col2e", "col2o",
                 "wd", "shd", "wc", "bc")


def vgg_forward(packed, x_nchw, *, num_classes=10, batch_tile=8):
    """Whole VGG forward as a single pallas_call over a batch-tiled parallel grid."""
    n, cin, h, w = x_nchw.shape
    assert h % 4 == 0 and w % 4 == 0, "two 2x2 max-pools need H, W divisible by 4"
    B = batch_tile
    h2, w2 = h // 2, w // 2
    c1 = packed["wb1"].shape[-1] // w
    R1 = B * (h + 1) + 1
    R2 = B * (h2 + 1) + 1
    out_lanes = packed["wc"].shape[-1]
    assert packed["sel1e"].shape == (R2, B * (h + 1) - 1), "selectors built for other B/h"

    # ---- wrapper-side layout plumbing: NCHW -> per-tile padded lane-dense slab --------
    n_tiles = -(-n // B)
    n_pad = n_tiles * B
    xf = x_nchw.astype(jnp.float32)
    if n_pad != n:
        xf = jnp.concatenate([xf, jnp.zeros((n_pad - n,) + xf.shape[1:], xf.dtype)], 0)
    xs = jnp.transpose(xf, (0, 2, 1, 3)).reshape(n_pad, h, cin * w)  # lanes: ci*w + wj
    xs = jnp.pad(xs, ((0, 0), (0, 1), (0, 0)))                       # per-image bottom pad
    xs = xs.reshape(n_tiles, B * (h + 1), cin * w)
    x_slab = jnp.pad(xs, ((0, 0), (1, 0), (0, 0)))                   # per-tile top pad

    def full(name):
        arr = packed[name]
        return pl.BlockSpec(arr.shape, lambda i, nd=arr.ndim: (0,) * nd)

    out = pl.pallas_call(
        _vgg_kernel,
        out_shape=jax.ShapeDtypeStruct((n_tiles, B, out_lanes), jnp.float32),
        grid_spec=pltpu.PrefetchScalarGridSpec(
            num_scalar_prefetch=0,
            grid=(n_tiles,),
            in_specs=[pl.BlockSpec((1, R1, cin * w), lambda i: (i, 0, 0))]
                     + [full(k) for k in _PACKED_ORDER],
            out_specs=pl.BlockSpec((1, B, out_lanes), lambda i: (i, 0, 0)),
            scratch_shapes=[pltpu.VMEM((R2, w2 * c1), jnp.float32)],  # padded pool1 slab
        ),
        compiler_params=pltpu.CompilerParams(
            dimension_semantics=("parallel",)),   # v7x: batch tiles across the 2 TCs
    )(x_slab, *[packed[k] for k in _PACKED_ORDER])
    return out.reshape(n_pad, out_lanes)[:n, :num_classes]


# ----------------------------------------------------------------------------
# One-time host-side parameter packing (BN folding, banded conv weights, pool selectors)
# ----------------------------------------------------------------------------
def _banded_conv_weight(w_hwio_scaled, w_spatial, c_minor_in):
    """Per-kh banded matrices turning a 3x3/pad-1 conv into row-slab matmuls.

    Input lanes:  ci*w_spatial + wj   (c-major)  if not c_minor_in
                  wj*cin + ci         (w-major)  if c_minor_in
    Output lanes: wo*cout + co        (lane-dense, w-major / c-minor)
    w-padding is folded in (out-of-range taps become zero columns)."""
    w = np.asarray(w_hwio_scaled, np.float32)
    _, _, cin, cout = w.shape
    out = np.zeros((3, w_spatial * cin, w_spatial * cout), np.float32)
    for kh in range(3):
        for kw in range(3):
            for wo in range(w_spatial):
                wj = wo + kw - 1
                if not 0 <= wj < w_spatial:
                    continue
                cols = slice(wo * cout, (wo + 1) * cout)
                if c_minor_in:
                    out[kh, wj * cin:(wj + 1) * cin, cols] = w[kh, kw]
                else:
                    for ci in range(cin):
                        out[kh, ci * w_spatial + wj, cols] = w[kh, kw, ci]
    return out


def _pool_row_sel_padded(B, h_in, h_out):
    """Even/odd row selectors: (B*(h_in+1)-1 computed rows) -> padded slab with
    stride h_out+1 per image and a zero top pad (pad rows are all-zero selector rows)."""
    M = B * (h_in + 1) - 1
    R = B * (h_out + 1) + 1
    se = np.zeros((R, M), np.float32)
    so = np.zeros((R, M), np.float32)
    for b in range(B):
        for po in range(h_out):
            r = 1 + b * (h_out + 1) + po
            se[r, b * (h_in + 1) + 2 * po] = 1.0
            so[r, b * (h_in + 1) + 2 * po + 1] = 1.0
    return se, so


def _pool_row_sel_flat(B, h_in, h_out):
    """Even/odd row selectors producing (h_out*B) rows ordered row = hh*B + b."""
    M = B * (h_in + 1) - 1
    se = np.zeros((h_out * B, M), np.float32)
    so = np.zeros((h_out * B, M), np.float32)
    for b in range(B):
        for po in range(h_out):
            r = po * B + b
            se[r, b * (h_in + 1) + 2 * po] = 1.0
            so[r, b * (h_in + 1) + 2 * po + 1] = 1.0
    return se, so


def _pool_col_sel(w_in, ch):
    """Even/odd w-block column selectors for a lane-packed (rows, w_in*ch) map."""
    w_out = w_in // 2
    ce = np.zeros((w_in * ch, w_out * ch), np.float32)
    co = np.zeros((w_in * ch, w_out * ch), np.float32)
    for wo in range(w_out):
        for c in range(ch):
            ce[2 * wo * ch + c, wo * ch + c] = 1.0
            co[(2 * wo + 1) * ch + c, wo * ch + c] = 1.0
    return ce, co


def prepare_params(p, *, height=16, width=16, batch_tile=8, out_lanes=128):
    """Fold BN into weights, build banded conv matrices, build bf16 pool selectors,
    permute dense rows to the kernel's pooled layout (folds the NCHW flatten), and
    zero-pad the classifier to 128 output lanes."""
    f32 = np.float32

    def a(name):
        return np.asarray(p[name], f32)

    cin, c1 = p["c1_w"].shape[2], p["c1_w"].shape[3]
    c2 = p["c2_w"].shape[3]
    h1, w1 = height, width
    h2, w2 = h1 // 2, w1 // 2
    h3, w3 = h2 // 2, w2 // 2
    B = batch_tile

    s1 = a("bn1_g") / np.sqrt(a("bn1_v") + EPS)
    s2 = a("bn2_g") / np.sqrt(a("bn2_v") + EPS)
    wb1 = _banded_conv_weight(a("c1_w") * s1, w1, c_minor_in=False)
    wb2 = _banded_conv_weight(a("c2_w") * s2, w2, c_minor_in=True)
    sh1 = np.tile((a("c1_b") - a("bn1_m")) * s1 + a("bn1_b"), w1)
    sh2 = np.tile((a("c2_b") - a("bn2_m")) * s2 + a("bn2_b"), w2)

    sd = a("bnd_g") / np.sqrt(a("bnd_v") + EPS)
    d_w = a("d_w") * sd[None, :]                       # (flat, hidden), BN1d scale folded
    hidden = d_w.shape[1]
    wd = np.zeros((h3, w3 * c2, hidden), f32)
    for hh in range(h3):                               # fold torch NCHW .view(N,-1) order
        for ww in range(w3):
            for co in range(c2):
                wd[hh, ww * c2 + co] = d_w[co * h3 * w3 + hh * w3 + ww]
    shd = (a("d_b") - a("bnd_m")) * sd + a("bnd_b")

    cls_w, cls_b = a("cls_w"), a("cls_b")
    num_classes = cls_w.shape[1]
    wc = np.zeros((hidden, out_lanes), f32)
    wc[:, :num_classes] = cls_w
    bc = np.zeros((1, out_lanes), f32)
    bc[0, :num_classes] = cls_b

    s1e, s1o = _pool_row_sel_padded(B, h1, h2)
    s2e, s2o = _pool_row_sel_flat(B, h2, h3)
    c1e, c1o = _pool_col_sel(w1, c1)
    c2e, c2o = _pool_col_sel(w2, c2)

    bf16 = jnp.bfloat16
    return {
        "wb1": jnp.asarray(wb1, bf16), "sh1": jnp.asarray(sh1[None, :], jnp.float32),
        "wb2": jnp.asarray(wb2, bf16), "sh2": jnp.asarray(sh2[None, :], jnp.float32),
        "wd": jnp.asarray(wd, bf16),   "shd": jnp.asarray(shd[None, :], jnp.float32),
        "wc": jnp.asarray(wc, bf16),   "bc": jnp.asarray(bc, jnp.float32),
        "sel1e": jnp.asarray(s1e, bf16), "sel1o": jnp.asarray(s1o, bf16),
        "col1e": jnp.asarray(c1e, bf16), "col1o": jnp.asarray(c1o, bf16),
        "sel2e": jnp.asarray(s2e, bf16), "sel2o": jnp.asarray(s2o, bf16),
        "col2e": jnp.asarray(c2e, bf16), "col2o": jnp.asarray(c2o, bf16),
    }


# ----------------------------------------------------------------------------
# Parameter init (matches the torch module's _initialize_weights, eval-mode BN stats)
# ----------------------------------------------------------------------------
def init_params(key, in_ch=3, c1=8, c2=16, spatial=16, hidden=512, num_classes=10):
    k1, k2, k3, k4 = jax.random.split(key, 4)
    flat = c2 * (spatial // 4) * (spatial // 4)
    return {
        # Conv2d: normal(0, sqrt(2 / (kh*kw*out_channels))), bias = 0
        "c1_w": jax.random.normal(k1, (3, 3, in_ch, c1), jnp.float32)
                * math.sqrt(2.0 / (9 * c1)),
        "c1_b": jnp.zeros((c1,), jnp.float32),
        "bn1_g": jnp.ones((c1,), jnp.float32), "bn1_b": jnp.zeros((c1,), jnp.float32),
        "bn1_m": jnp.zeros((c1,), jnp.float32), "bn1_v": jnp.ones((c1,), jnp.float32),
        "c2_w": jax.random.normal(k2, (3, 3, c1, c2), jnp.float32)
                * math.sqrt(2.0 / (9 * c2)),
        "c2_b": jnp.zeros((c2,), jnp.float32),
        "bn2_g": jnp.ones((c2,), jnp.float32), "bn2_b": jnp.zeros((c2,), jnp.float32),
        "bn2_m": jnp.zeros((c2,), jnp.float32), "bn2_v": jnp.ones((c2,), jnp.float32),
        # Linear: normal(0, 0.01), bias = 0   (stored as (in, out), NCHW-flatten rows)
        "d_w": jax.random.normal(k3, (flat, hidden), jnp.float32) * 0.01,
        "d_b": jnp.zeros((hidden,), jnp.float32),
        "bnd_g": jnp.ones((hidden,), jnp.float32), "bnd_b": jnp.zeros((hidden,), jnp.float32),
        "bnd_m": jnp.zeros((hidden,), jnp.float32), "bnd_v": jnp.ones((hidden,), jnp.float32),
        "cls_w": jax.random.normal(k4, (hidden, num_classes), jnp.float32) * 0.01,
        "cls_b": jnp.zeros((num_classes,), jnp.float32),
    }


# ----------------------------------------------------------------------------
# Pure-JAX reference (same math, f32 HIGHEST precision) for a sanity check
# ----------------------------------------------------------------------------
def vgg_reference(params, x_nchw):
    x = jnp.transpose(x_nchw, (0, 2, 3, 1))

    def conv_bn_relu(x, w, b, g, be, m, v):
        y = jax.lax.conv_general_dilated(
            x, w, (1, 1), "SAME",
            dimension_numbers=("NHWC", "HWIO", "NHWC"),
            precision=jax.lax.Precision.HIGHEST) + b
        y = (y - m) / jnp.sqrt(v + EPS) * g + be
        return jnp.maximum(y, 0.0)

    def pool(x):
        N, H, W, C = x.shape
        return jnp.max(x.reshape(N, H // 2, 2, W // 2, 2, C), axis=(2, 4))

    x = pool(conv_bn_relu(x, params["c1_w"], params["c1_b"], params["bn1_g"],
                          params["bn1_b"], params["bn1_m"], params["bn1_v"]))
    x = pool(conv_bn_relu(x, params["c2_w"], params["c2_b"], params["bn2_g"],
                          params["bn2_b"], params["bn2_m"], params["bn2_v"]))
    N, H, W, C = x.shape
    x = jnp.transpose(x, (0, 3, 1, 2)).reshape(N, C * H * W)
    x = jnp.dot(x, params["d_w"], precision=jax.lax.Precision.HIGHEST) + params["d_b"]
    x = (x - params["bnd_m"]) / jnp.sqrt(params["bnd_v"] + EPS) * params["bnd_g"] \
        + params["bnd_b"]
    x = jnp.maximum(x, 0.0)
    x = jnp.dot(x, params["cls_w"], precision=jax.lax.Precision.HIGHEST) + params["cls_b"]
    return x


if __name__ == "__main__":
    key = jax.random.PRNGKey(0)
    pkey, xkey = jax.random.split(key)
    params = init_params(pkey, in_ch=3, c1=8, c2=16, spatial=16,
                         hidden=512, num_classes=10)
    packed = prepare_params(params, height=16, width=16, batch_tile=8)
    x = jax.random.normal(xkey, (16, 3, 16, 16), jnp.float32)   # NCHW, like PyTorch

    fwd = jax.jit(functools.partial(vgg_forward, num_classes=10, batch_tile=8))
    out = jax.block_until_ready(fwd(packed, x))
    ref = jax.block_until_ready(vgg_reference(params, x))

    assert out.shape == (16, 10), out.shape
    assert bool(jnp.all(jnp.isfinite(out)))
    assert bool(jnp.allclose(out, ref, rtol=2e-2, atol=2e-2)), \
        (jnp.max(jnp.abs(out - ref)), out[0], ref[0])
    print("KERNEL_OK")
</pallas_src>

<mosaic_0001>
module attributes {stable_mosaic.version = 11 : i64} {
  func.func @_vgg_kernel(%arg0: i32, %arg1: memref<1x137x48xf32, #tpu.memory_space<vmem>>, %arg2: memref<3x48x128xbf16, #tpu.memory_space<vmem>>, %arg3: memref<1x128xf32, #tpu.memory_space<vmem>>, %arg4: memref<73x135xbf16, #tpu.memory_space<vmem>>, %arg5: memref<73x135xbf16, #tpu.memory_space<vmem>>, %arg6: memref<128x64xbf16, #tpu.memory_space<vmem>>, %arg7: memref<128x64xbf16, #tpu.memory_space<vmem>>, %arg8: memref<3x64x128xbf16, #tpu.memory_space<vmem>>, %arg9: memref<1x128xf32, #tpu.memory_space<vmem>>, %arg10: memref<32x71xbf16, #tpu.memory_space<vmem>>, %arg11: memref<32x71xbf16, #tpu.memory_space<vmem>>, %arg12: memref<128x64xbf16, #tpu.memory_space<vmem>>, %arg13: memref<128x64xbf16, #tpu.memory_space<vmem>>, %arg14: memref<4x64x512xbf16, #tpu.memory_space<vmem>>, %arg15: memref<1x512xf32, #tpu.memory_space<vmem>>, %arg16: memref<512x128xbf16, #tpu.memory_space<vmem>>, %arg17: memref<1x128xf32, #tpu.memory_space<vmem>>, %arg18: memref<1x8x128xf32, #tpu.memory_space<vmem>>, %arg19: memref<73x64xf32, #tpu.memory_space<vmem>>) attributes {dimension_semantics = [#tpu.dimension_semantics<parallel>], iteration_bounds = array<i64: 2>, scalar_prefetch = 0 : i64, scratch_operands = 1 : i64, tpu.core_type = #tpu.core_type<tc>, window_params = [{transform_indices = @transform_0, window_bounds = array<i64: 1, 137, 48>}, {pipeline_mode = #tpu.pipeline_mode<synchronous>, transform_indices = @transform_1, window_bounds = array<i64: 3, 48, 128>}, {pipeline_mode = #tpu.pipeline_mode<synchronous>, transform_indices = @transform_2, window_bounds = array<i64: 1, 128>}, {pipeline_mode = #tpu.pipeline_mode<synchronous>, transform_indices = @transform_3, window_bounds = array<i64: 73, 135>}, {pipeline_mode = #tpu.pipeline_mode<synchronous>, transform_indices = @transform_4, window_bounds = array<i64: 73, 135>}, {pipeline_mode = #tpu.pipeline_mode<synchronous>, transform_indices = @transform_5, window_bounds = array<i64: 128, 64>}, {pipeline_mode = #tpu.pipeline_mode<synchronous>, transform_indices = @transform_6, window_bounds = array<i64: 128, 64>}, {pipeline_mode = #tpu.pipeline_mode<synchronous>, transform_indices = @transform_7, window_bounds = array<i64: 3, 64, 128>}, {pipeline_mode = #tpu.pipeline_mode<synchronous>, transform_indices = @transform_8, window_bounds = array<i64: 1, 128>}, {pipeline_mode = #tpu.pipeline_mode<synchronous>, transform_indices = @transform_9, window_bounds = array<i64: 32, 71>}, {pipeline_mode = #tpu.pipeline_mode<synchronous>, transform_indices = @transform_10, window_bounds = array<i64: 32, 71>}, {pipeline_mode = #tpu.pipeline_mode<synchronous>, transform_indices = @transform_11, window_bounds = array<i64: 128, 64>}, {pipeline_mode = #tpu.pipeline_mode<synchronous>, transform_indices = @transform_12, window_bounds = array<i64: 128, 64>}, {pipeline_mode = #tpu.pipeline_mode<synchronous>, transform_indices = @transform_13, window_bounds = array<i64: 4, 64, 512>}, {pipeline_mode = #tpu.pipeline_mode<synchronous>, transform_indices = @transform_14, window_bounds = array<i64: 1, 512>}, {pipeline_mode = #tpu.pipeline_mode<synchronous>, transform_indices = @transform_15, window_bounds = array<i64: 512, 128>}, {pipeline_mode = #tpu.pipeline_mode<synchronous>, transform_indices = @transform_16, window_bounds = array<i64: 1, 128>}, {transform_indices = @transform_17, window_bounds = array<i64: 1, 8, 128>}]} {
    %c0 = arith.constant 0 : index
    %c0_0 = arith.constant 0 : index
    %c0_1 = arith.constant 0 : index
    %0 = vector.load %arg1[%c0, %c0_0, %c0_1] : memref<1x137x48xf32, #tpu.memory_space<vmem>>, vector<1x135x48xf32>
    %1 = vector.shape_cast %0 : vector<1x135x48xf32> to vector<135x48xf32>
    %2 = arith.truncf %1 : vector<135x48xf32> to vector<135x48xbf16>
    %c0_2 = arith.constant 0 : index
    %c0_3 = arith.constant 0 : index
    %c0_4 = arith.constant 0 : index
    %3 = vector.load %arg2[%c0_2, %c0_3, %c0_4] : memref<3x48x128xbf16, #tpu.memory_space<vmem>>, vector<1x48x128xbf16>
    %4 = vector.shape_cast %3 : vector<1x48x128xbf16> to vector<48x128xbf16>
    %cst = arith.constant dense<0.000000e+00> : vector<135x128xf32>
    %5 = tpu.matmul %2, %4, %cst {dimension_numbers = #tpu.dot_dimension_numbers<[1], [0], [0], [1], [0, 0, 1, 1], [], []>} : vector<135x48xbf16>, vector<48x128xbf16>, vector<135x128xf32> -> vector<135x128xf32>
    %c0_5 = arith.constant 0 : index
    %c1 = arith.constant 1 : index
    %c0_6 = arith.constant 0 : index
    %6 = vector.load %arg1[%c0_5, %c1, %c0_6] : memref<1x137x48xf32, #tpu.memory_space<vmem>>, vector<1x135x48xf32>
    %7 = vector.shape_cast %6 : vector<1x135x48xf32> to vector<135x48xf32>
    %8 = arith.truncf %7 : vector<135x48xf32> to vector<135x48xbf16>
    %c1_7 = arith.constant 1 : index
    %c0_8 = arith.constant 0 : index
    %c0_9 = arith.constant 0 : index
    %9 = vector.load %arg2[%c1_7, %c0_8, %c0_9] : memref<3x48x128xbf16, #tpu.memory_space<vmem>>, vector<1x48x128xbf16>
    %10 = vector.shape_cast %9 : vector<1x48x128xbf16> to vector<48x128xbf16>
    %cst_10 = arith.constant dense<0.000000e+00> : vector<135x128xf32>
    %11 = tpu.matmul %8, %10, %cst_10 {dimension_numbers = #tpu.dot_dimension_numbers<[1], [0], [0], [1], [0, 0, 1, 1], [], []>} : vector<135x48xbf16>, vector<48x128xbf16>, vector<135x128xf32> -> vector<135x128xf32>
    %12 = arith.addf %5, %11 : vector<135x128xf32>
    %c0_11 = arith.constant 0 : index
    %c2 = arith.constant 2 : index
    %c0_12 = arith.constant 0 : index
    %13 = vector.load %arg1[%c0_11, %c2, %c0_12] : memref<1x137x48xf32, #tpu.memory_space<vmem>>, vector<1x135x48xf32>
    %14 = vector.shape_cast %13 : vector<1x135x48xf32> to vector<135x48xf32>
    %15 = arith.truncf %14 : vector<135x48xf32> to vector<135x48xbf16>
    %c2_13 = arith.constant 2 : index
    %c0_14 = arith.constant 0 : index
    %c0_15 = arith.constant 0 : index
    %16 = vector.load %arg2[%c2_13, %c0_14, %c0_15] : memref<3x48x128xbf16, #tpu.memory_space<vmem>>, vector<1x48x128xbf16>
    %17 = vector.shape_cast %16 : vector<1x48x128xbf16> to vector<48x128xbf16>
    %cst_16 = arith.constant dense<0.000000e+00> : vector<135x128xf32>
    %18 = tpu.matmul %15, %17, %cst_16 {dimension_numbers = #tpu.dot_dimension_numbers<[1], [0], [0], [1], [0, 0, 1, 1], [], []>} : vector<135x48xbf16>, vector<48x128xbf16>, vector<135x128xf32> -> vector<135x128xf32>
    %19 = arith.addf %12, %18 : vector<135x128xf32>
    %c0_17 = arith.constant 0 : index
    %c0_18 = arith.constant 0 : index
    %20 = vector.load %arg3[%c0_17, %c0_18] : memref<1x128xf32, #tpu.memory_space<vmem>>, vector<1x128xf32>
    %21 = vector.broadcast %20 : vector<1x128xf32> to vector<135x128xf32>
    %22 = arith.addf %19, %21 : vector<135x128xf32>
    %cst_19 = arith.constant 0.000000e+00 : f32
    %23 = vector.broadcast %cst_19 : f32 to vector<135x128xf32>
    %24 = arith.maximumf %22, %23 : vector<135x128xf32>
    %25 = arith.truncf %24 : vector<135x128xf32> to vector<135x128xbf16>
    %c0_20 = arith.constant 0 : index
    %c0_21 = arith.constant 0 : index
    %26 = vector.load %arg4[%c0_20, %c0_21] : memref<73x135xbf16, #tpu.memory_space<vmem>>, vector<73x135xbf16>
    %cst_22 = arith.constant dense<0.000000e+00> : vector<73x128xf32>
    %27 = tpu.matmul %26, %25, %cst_22 {dimension_numbers = #tpu.dot_dimension_numbers<[1], [0], [0], [1], [0, 0, 1, 1], [], []>} : vector<73x135xbf16>, vector<135x128xbf16>, vector<73x128xf32> -> vector<73x128xf32>
    %c0_23 = arith.constant 0 : index
    %c0_24 = arith.constant 0 : index
    %28 = vector.load %arg5[%c0_23, %c0_24] : memref<73x135xbf16, #tpu.memory_space<vmem>>, vector<73x135xbf16>
    %cst_25 = arith.constant dense<0.000000e+00> : vector<73x128xf32>
    %29 = tpu.matmul %28, %25, %cst_25 {dimension_numbers = #tpu.dot_dimension_numbers<[1], [0], [0], [1], [0, 0, 1, 1], [], []>} : vector<73x135xbf16>, vector<135x128xbf16>, vector<73x128xf32> -> vector<73x128xf32>
    %30 = arith.maximumf %27, %29 : vector<73x128xf32>
    %31 = arith.truncf %30 : vector<73x128xf32> to vector<73x128xbf16>
    %c0_26 = arith.constant 0 : index
    %c0_27 = arith.constant 0 : index
    %32 = vector.load %arg6[%c0_26, %c0_27] : memref<128x64xbf16, #tpu.memory_space<vmem>>, vector<128x64xbf16>
    %cst_28 = arith.constant dense<0.000000e+00> : vector<73x64xf32>
    %33 = tpu.matmul %31, %32, %cst_28 {dimension_numbers = #tpu.dot_dimension_numbers<[1], [0], [0], [1], [0, 0, 1, 1], [], []>} : vector<73x128xbf16>, vector<128x64xbf16>, vector<73x64xf32> -> vector<73x64xf32>
    %c0_29 = arith.constant 0 : index
    %c0_30 = arith.constant 0 : index
    %34 = vector.load %arg7[%c0_29, %c0_30] : memref<128x64xbf16, #tpu.memory_space<vmem>>, vector<128x64xbf16>
    %cst_31 = arith.constant dense<0.000000e+00> : vector<73x64xf32>
    %35 = tpu.matmul %31, %34, %cst_31 {dimension_numbers = #tpu.dot_dimension_numbers<[1], [0], [0], [1], [0, 0, 1, 1], [], []>} : vector<73x128xbf16>, vector<128x64xbf16>, vector<73x64xf32> -> vector<73x64xf32>
    %36 = arith.maximumf %33, %35 : vector<73x64xf32>
    %c0_32 = arith.constant 0 : index
    %c0_33 = arith.constant 0 : index
    %37 = vector.load %arg19[%c0_32, %c0_33] : memref<73x64xf32, #tpu.memory_space<vmem>>, vector<73x64xf32>
    tpu.vector_store %arg19[%c0_32, %c0_33], %36 {strides = array<i32>} : memref<73x64xf32, #tpu.memory_space<vmem>>, vector<73x64xf32>,
    %c0_34 = arith.constant 0 : index
    %c0_35 = arith.constant 0 : index
    %38 = vector.load %arg19[%c0_34, %c0_35] : memref<73x64xf32, #tpu.memory_space<vmem>>, vector<71x64xf32>
    %39 = arith.truncf %38 : vector<71x64xf32> to vector<71x64xbf16>
    %c0_36 = arith.constant 0 : index
    %c0_37 = arith.constant 0 : index
    %c0_38 = arith.constant 0 : index
    %40 = vector.load %arg8[%c0_36, %c0_37, %c0_38] : memref<3x64x128xbf16, #tpu.memory_space<vmem>>, vector<1x64x128xbf16>
    %41 = vector.shape_cast %40 : vector<1x64x128xbf16> to vector<64x128xbf16>
    %cst_39 = arith.constant dense<0.000000e+00> : vector<71x128xf32>
    %42 = tpu.matmul %39, %41, %cst_39 {dimension_numbers = #tpu.dot_dimension_numbers<[1], [0], [0], [1], [0, 0, 1, 1], [], []>} : vector<71x64xbf16>, vector<64x128xbf16>, vector<71x128xf32> -> vector<71x128xf32>
    %c1_40 = arith.constant 1 : index
    %c0_41 = arith.constant 0 : index
    %43 = vector.load %arg19[%c1_40, %c0_41] : memref<73x64xf32, #tpu.memory_space<vmem>>, vector<71x64xf32>
    %44 = arith.truncf %43 : vector<71x64xf32> to vector<71x64xbf16>
    %c1_42 = arith.constant 1 : index
    %c0_43 = arith.constant 0 : index
    %c0_44 = arith.constant 0 : index
    %45 = vector.load %arg8[%c1_42, %c0_43, %c0_44] : memref<3x64x128xbf16, #tpu.memory_space<vmem>>, vector<1x64x128xbf16>
    %46 = vector.shape_cast %45 : vector<1x64x128xbf16> to vector<64x128xbf16>
    %cst_45 = arith.constant dense<0.000000e+00> : vector<71x128xf32>
    %47 = tpu.matmul %44, %46, %cst_45 {dimension_numbers = #tpu.dot_dimension_numbers<[1], [0], [0], [1], [0, 0, 1, 1], [], []>} : vector<71x64xbf16>, vector<64x128xbf16>, vector<71x128xf32> -> vector<71x128xf32>
    %48 = arith.addf %42, %47 : vector<71x128xf32>
    %c2_46 = arith.constant 2 : index
    %c0_47 = arith.constant 0 : index
    %49 = vector.load %arg19[%c2_46, %c0_47] : memref<73x64xf32, #tpu.memory_space<vmem>>, vector<71x64xf32>
    %50 = arith.truncf %49 : vector<71x64xf32> to vector<71x64xbf16>
    %c2_48 = arith.constant 2 : index
    %c0_49 = arith.constant 0 : index
    %c0_50 = arith.constant 0 : index
    %51 = vector.load %arg8[%c2_48, %c0_49, %c0_50] : memref<3x64x128xbf16, #tpu.memory_space<vmem>>, vector<1x64x128xbf16>
    %52 = vector.shape_cast %51 : vector<1x64x128xbf16> to vector<64x128xbf16>
    %cst_51 = arith.constant dense<0.000000e+00> : vector<71x128xf32>
    %53 = tpu.matmul %50, %52, %cst_51 {dimension_numbers = #tpu.dot_dimension_numbers<[1], [0], [0], [1], [0, 0, 1, 1], [], []>} : vector<71x64xbf16>, vector<64x128xbf16>, vector<71x128xf32> -> vector<71x128xf32>
    %54 = arith.addf %48, %53 : vector<71x128xf32>
    %c0_52 = arith.constant 0 : index
    %c0_53 = arith.constant 0 : index
    %55 = vector.load %arg9[%c0_52, %c0_53] : memref<1x128xf32, #tpu.memory_space<vmem>>, vector<1x128xf32>
    %56 = vector.broadcast %55 : vector<1x128xf32> to vector<71x128xf32>
    %57 = arith.addf %54, %56 : vector<71x128xf32>
    %cst_54 = arith.constant 0.000000e+00 : f32
    %58 = vector.broadcast %cst_54 : f32 to vector<71x128xf32>
    %59 = arith.maximumf %57, %58 : vector<71x128xf32>
    %60 = arith.truncf %59 : vector<71x128xf32> to vector<71x128xbf16>
    %c0_55 = arith.constant 0 : index
    %c0_56 = arith.constant 0 : index
    %61 = vector.load %arg10[%c0_55, %c0_56] : memref<32x71xbf16, #tpu.memory_space<vmem>>, vector<32x71xbf16>
    %cst_57 = arith.constant dense<0.000000e+00> : vector<32x128xf32>
    %62 = tpu.matmul %61, %60, %cst_57 {dimension_numbers = #tpu.dot_dimension_numbers<[1], [0], [0], [1], [0, 0, 1, 1], [], []>} : vector<32x71xbf16>, vector<71x128xbf16>, vector<32x128xf32> -> vector<32x128xf32>
    %c0_58 = arith.constant 0 : index
    %c0_59 = arith.constant 0 : index
    %63 = vector.load %arg11[%c0_58, %c0_59] : memref<32x71xbf16, #tpu.memory_space<vmem>>, vector<32x71xbf16>
    %cst_60 = arith.constant dense<0.000000e+00> : vector<32x128xf32>
    %64 = tpu.matmul %63, %60, %cst_60 {dimension_numbers = #tpu.dot_dimension_numbers<[1], [0], [0], [1], [0, 0, 1, 1], [], []>} : vector<32x71xbf16>, vector<71x128xbf16>, vector<32x128xf32> -> vector<32x128xf32>
    %65 = arith.maximumf %62, %64 : vector<32x128xf32>
    %66 = arith.truncf %65 : vector<32x128xf32> to vector<32x128xbf16>
    %c0_61 = arith.constant 0 : index
    %c0_62 = arith.constant 0 : index
    %67 = vector.load %arg12[%c0_61, %c0_62] : memref<128x64xbf16, #tpu.memory_space<vmem>>, vector<128x64xbf16>
    %cst_63 = arith.constant dense<0.000000e+00> : vector<32x64xf32>
    %68 = tpu.matmul %66, %67, %cst_63 {dimension_numbers = #tpu.dot_dimension_numbers<[1], [0], [0], [1], [0, 0, 1, 1], [], []>} : vector<32x128xbf16>, vector<128x64xbf16>, vector<32x64xf32> -> vector<32x64xf32>
    %c0_64 = arith.constant 0 : index
    %c0_65 = arith.constant 0 : index
    %69 = vector.load %arg13[%c0_64, %c0_65] : memref<128x64xbf16, #tpu.memory_space<vmem>>, vector<128x64xbf16>
    %cst_66 = arith.constant dense<0.000000e+00> : vector<32x64xf32>
    %70 = tpu.matmul %66, %69, %cst_66 {dimension_numbers = #tpu.dot_dimension_numbers<[1], [0], [0], [1], [0, 0, 1, 1], [], []>} : vector<32x128xbf16>, vector<128x64xbf16>, vector<32x64xf32> -> vector<32x64xf32>
    %71 = arith.maximumf %68, %70 : vector<32x64xf32>
    %72 = vector.extract_strided_slice %71 {offsets = [0, 0], sizes = [8, 64], strides = [1, 1]} : vector<32x64xf32> to vector<8x64xf32>
    %73 = arith.truncf %72 : vector<8x64xf32> to vector<8x64xbf16>
    %c0_67 = arith.constant 0 : index
    %c0_68 = arith.constant 0 : index
    %c0_69 = arith.constant 0 : index
    %74 = vector.load %arg14[%c0_67, %c0_68, %c0_69] : memref<4x64x512xbf16, #tpu.memory_space<vmem>>, vector<1x64x512xbf16>
    %75 = vector.shape_cast %74 : vector<1x64x512xbf16> to vector<64x512xbf16>
    %cst_70 = arith.constant dense<0.000000e+00> : vector<8x512xf32>
    %76 = tpu.matmul %73, %75, %cst_70 {dimension_numbers = #tpu.dot_dimension_numbers<[1], [0], [0], [1], [0, 0, 1, 1], [], []>} : vector<8x64xbf16>, vector<64x512xbf16>, vector<8x512xf32> -> vector<8x512xf32>
    %77 = vector.extract_strided_slice %71 {offsets = [8, 0], sizes = [8, 64], strides = [1, 1]} : vector<32x64xf32> to vector<8x64xf32>
    %78 = arith.truncf %77 : vector<8x64xf32> to vector<8x64xbf16>
    %c1_71 = arith.constant 1 : index
    %c0_72 = arith.constant 0 : index
    %c0_73 = arith.constant 0 : index
    %79 = vector.load %arg14[%c1_71, %c0_72, %c0_73] : memref<4x64x512xbf16, #tpu.memory_space<vmem>>, vector<1x64x512xbf16>
    %80 = vector.shape_cast %79 : vector<1x64x512xbf16> to vector<64x512xbf16>
    %cst_74 = arith.constant dense<0.000000e+00> : vector<8x512xf32>
    %81 = tpu.matmul %78, %80, %cst_74 {dimension_numbers = #tpu.dot_dimension_numbers<[1], [0], [0], [1], [0, 0, 1, 1], [], []>} : vector<8x64xbf16>, vector<64x512xbf16>, vector<8x512xf32> -> vector<8x512xf32>
    %82 = arith.addf %76, %81 : vector<8x512xf32>
    %83 = vector.extract_strided_slice %71 {offsets = [16, 0], sizes = [8, 64], strides = [1, 1]} : vector<32x64xf32> to vector<8x64xf32>
    %84 = arith.truncf %83 : vector<8x64xf32> to vector<8x64xbf16>
    %c2_75 = arith.constant 2 : index
    %c0_76 = arith.constant 0 : index
    %c0_77 = arith.constant 0 : index
    %85 = vector.load %arg14[%c2_75, %c0_76, %c0_77] : memref<4x64x512xbf16, #tpu.memory_space<vmem>>, vector<1x64x512xbf16>
    %86 = vector.shape_cast %85 : vector<1x64x512xbf16> to vector<64x512xbf16>
    %cst_78 = arith.constant dense<0.000000e+00> : vector<8x512xf32>
    %87 = tpu.matmul %84, %86, %cst_78 {dimension_numbers = #tpu.dot_dimension_numbers<[1], [0], [0], [1], [0, 0, 1, 1], [], []>} : vector<8x64xbf16>, vector<64x512xbf16>, vector<8x512xf32> -> vector<8x512xf32>
    %88 = arith.addf %82, %87 : vector<8x512xf32>
    %89 = vector.extract_strided_slice %71 {offsets = [24, 0], sizes = [8, 64], strides = [1, 1]} : vector<32x64xf32> to vector<8x64xf32>
    %90 = arith.truncf %89 : vector<8x64xf32> to vector<8x64xbf16>
    %c3 = arith.constant 3 : index
    %c0_79 = arith.constant 0 : index
    %c0_80 = arith.constant 0 : index
    %91 = vector.load %arg14[%c3, %c0_79, %c0_80] : memref<4x64x512xbf16, #tpu.memory_space<vmem>>, vector<1x64x512xbf16>
    %92 = vector.shape_cast %91 : vector<1x64x512xbf16> to vector<64x512xbf16>
    %cst_81 = arith.constant dense<0.000000e+00> : vector<8x512xf32>
    %93 = tpu.matmul %90, %92, %cst_81 {dimension_numbers = #tpu.dot_dimension_numbers<[1], [0], [0], [1], [0, 0, 1, 1], [], []>} : vector<8x64xbf16>, vector<64x512xbf16>, vector<8x512xf32> -> vector<8x512xf32>
    %94 = arith.addf %88, %93 : vector<8x512xf32>
    %c0_82 = arith.constant 0 : index
    %c0_83 = arith.constant 0 : index
    %95 = vector.load %arg15[%c0_82, %c0_83] : memref<1x512xf32, #tpu.memory_space<vmem>>, vector<1x512xf32>
    %96 = vector.broadcast %95 : vector<1x512xf32> to vector<8x512xf32>
    %97 = arith.addf %94, %96 : vector<8x512xf32>
    %cst_84 = arith.constant 0.000000e+00 : f32
    %98 = vector.broadcast %cst_84 : f32 to vector<8x512xf32>
    %99 = arith.maximumf %97, %98 : vector<8x512xf32>
    %100 = arith.truncf %99 : vector<8x512xf32> to vector<8x512xbf16>
    %c0_85 = arith.constant 0 : index
    %c0_86 = arith.constant 0 : index
    %101 = vector.load %arg16[%c0_85, %c0_86] : memref<512x128xbf16, #tpu.memory_space<vmem>>, vector<512x128xbf16>
    %cst_87 = arith.constant dense<0.000000e+00> : vector<8x128xf32>
    %102 = tpu.matmul %100, %101, %cst_87 {dimension_numbers = #tpu.dot_dimension_numbers<[1], [0], [0], [1], [0, 0, 1, 1], [], []>} : vector<8x512xbf16>, vector<512x128xbf16>, vector<8x128xf32> -> vector<8x128xf32>
    %c0_88 = arith.constant 0 : index
    %c0_89 = arith.constant 0 : index
    %103 = vector.load %arg17[%c0_88, %c0_89] : memref<1x128xf32, #tpu.memory_space<vmem>>, vector<1x128xf32>
    %104 = vector.broadcast %103 : vector<1x128xf32> to vector<8x128xf32>
    %105 = arith.addf %102, %104 : vector<8x128xf32>
    %c0_90 = arith.constant 0 : index
    %c0_91 = arith.constant 0 : index
    %c0_92 = arith.constant 0 : index
    %106 = vector.load %arg18[%c0_90, %c0_91, %c0_92] : memref<1x8x128xf32, #tpu.memory_space<vmem>>, vector<1x8x128xf32>
    %107 = vector.shape_cast %106 : vector<1x8x128xf32> to vector<8x128xf32>
    %108 = vector.shape_cast %105 : vector<8x128xf32> to vector<1x8x128xf32>
    tpu.vector_store %arg18[%c0_90, %c0_91, %c0_92], %108 {strides = array<i32>} : memref<1x8x128xf32, #tpu.memory_space<vmem>>, vector<1x8x128xf32>,
    return
  }
  func.func @transform_0(%arg0: i32) -> (i32, i32, i32) {
    %c0_i32 = arith.constant 0 : i32
    %c0_i32_0 = arith.constant 0 : i32
    %c0_i32_1 = arith.constant 0 : i32
    return %arg0, %c0_i32, %c0_i32_0 : i32, i32, i32
  }
  func.func @transform_1(%arg0: i32) -> (i32, i32, i32) {
    %c0_i32 = arith.constant 0 : i32
    %c0_i32_0 = arith.constant 0 : i32
    %c0_i32_1 = arith.constant 0 : i32
    %c0_i32_2 = arith.constant 0 : i32
    return %c0_i32, %c0_i32_0, %c0_i32_1 : i32, i32, i32
  }
  func.func @transform_2(%arg0: i32) -> (i32, i32) {
    %c0_i32 = arith.constant 0 : i32
    %c0_i32_0 = arith.constant 0 : i32
    %c0_i32_1 = arith.constant 0 : i32
    return %c0_i32, %c0_i32_0 : i32, i32
  }
  func.func @transform_3(%arg0: i32) -> (i32, i32) {
    %c0_i32 = arith.constant 0 : i32
    %c0_i32_0 = arith.constant 0 : i32
    %c0_i32_1 = arith.constant 0 : i32
    return %c0_i32, %c0_i32_0 : i32, i32
  }
  func.func @transform_4(%arg0: i32) -> (i32, i32) {
    %c0_i32 = arith.constant 0 : i32
    %c0_i32_0 = arith.constant 0 : i32
    %c0_i32_1 = arith.constant 0 : i32
    return %c0_i32, %c0_i32_0 : i32, i32
  }
  func.func @transform_5(%arg0: i32) -> (i32, i32) {
    %c0_i32 = arith.constant 0 : i32
    %c0_i32_0 = arith.constant 0 : i32
    %c0_i32_1 = arith.constant 0 : i32
    return %c0_i32, %c0_i32_0 : i32, i32
  }
  func.func @transform_6(%arg0: i32) -> (i32, i32) {
    %c0_i32 = arith.constant 0 : i32
    %c0_i32_0 = arith.constant 0 : i32
    %c0_i32_1 = arith.constant 0 : i32
    return %c0_i32, %c0_i32_0 : i32, i32
  }
  func.func @transform_7(%arg0: i32) -> (i32, i32, i32) {
    %c0_i32 = arith.constant 0 : i32
    %c0_i32_0 = arith.constant 0 : i32
    %c0_i32_1 = arith.constant 0 : i32
    %c0_i32_2 = arith.constant 0 : i32
    return %c0_i32, %c0_i32_0, %c0_i32_1 : i32, i32, i32
  }
  func.func @transform_8(%arg0: i32) -> (i32, i32) {
    %c0_i32 = arith.constant 0 : i32
    %c0_i32_0 = arith.constant 0 : i32
    %c0_i32_1 = arith.constant 0 : i32
    return %c0_i32, %c0_i32_0 : i32, i32
  }
  func.func @transform_9(%arg0: i32) -> (i32, i32) {
    %c0_i32 = arith.constant 0 : i32
    %c0_i32_0 = arith.constant 0 : i32
    %c0_i32_1 = arith.constant 0 : i32
    return %c0_i32, %c0_i32_0 : i32, i32
  }
  func.func @transform_10(%arg0: i32) -> (i32, i32) {
    %c0_i32 = arith.constant 0 : i32
    %c0_i32_0 = arith.constant 0 : i32
    %c0_i32_1 = arith.constant 0 : i32
    return %c0_i32, %c0_i32_0 : i32, i32
  }
  func.func @transform_11(%arg0: i32) -> (i32, i32) {
    %c0_i32 = arith.constant 0 : i32
    %c0_i32_0 = arith.constant 0 : i32
    %c0_i32_1 = arith.constant 0 : i32
    return %c0_i32, %c0_i32_0 : i32, i32
  }
  func.func @transform_12(%arg0: i32) -> (i32, i32) {
    %c0_i32 = arith.constant 0 : i32
    %c0_i32_0 = arith.constant 0 : i32
    %c0_i32_1 = arith.constant 0 : i32
    return %c0_i32, %c0_i32_0 : i32, i32
  }
  func.func @transform_13(%arg0: i32) -> (i32, i32, i32) {
    %c0_i32 = arith.constant 0 : i32
    %c0_i32_0 = arith.constant 0 : i32
    %c0_i32_1 = arith.constant 0 : i32
    %c0_i32_2 = arith.constant 0 : i32
    return %c0_i32, %c0_i32_0, %c0_i32_1 : i32, i32, i32
  }
  func.func @transform_14(%arg0: i32) -> (i32, i32) {
    %c0_i32 = arith.constant 0 : i32
    %c0_i32_0 = arith.constant 0 : i32
    %c0_i32_1 = arith.constant 0 : i32
    return %c0_i32, %c0_i32_0 : i32, i32
  }
  func.func @transform_15(%arg0: i32) -> (i32, i32) {
    %c0_i32 = arith.constant 0 : i32
    %c0_i32_0 = arith.constant 0 : i32
    %c0_i32_1 = arith.constant 0 : i32
    return %c0_i32, %c0_i32_0 : i32, i32
  }
  func.func @transform_16(%arg0: i32) -> (i32, i32) {
    %c0_i32 = arith.constant 0 : i32
    %c0_i32_0 = arith.constant 0 : i32
    %c0_i32_1 = arith.constant 0 : i32
    return %c0_i32, %c0_i32_0 : i32, i32
  }
  func.func @transform_17(%arg0: i32) -> (i32, i32, i32) {
    %c0_i32 = arith.constant 0 : i32
    %c0_i32_0 = arith.constant 0 : i32
    %c0_i32_1 = arith.constant 0 : i32
    return %arg0, %c0_i32, %c0_i32_0 : i32, i32, i32
  }
}

</mosaic_0001>

<bundles_post_ra>
// kernel: vgg_forward.1
= control target key start
LH: loop header
LB: loop body
LE: loop exit
PB: predicated region body
PF: predicated region fallthrough
CT: control target
= control target key end

     0   :  { %s5469_s0 = inlined_call_operand.vmem [shape: f32[2,137,48], index: 0, kind: input, shape index: {}]   ;;  %s5470_s1 = inlined_call_operand.vmem [shape: bf16[3,48,128], index: 1, kind: input, shape index: {}]   ;;  %s5471_s2 = inlined_call_operand.vmem [shape: f32[1,128], index: 2, kind: input, shape index: {}]   ;;  %s5472_s3 = inlined_call_operand.vmem [shape: bf16[73,135], index: 3, kind: input, shape index: {}]   ;;  %s5473_s4 = inlined_call_operand.vmem [shape: bf16[73,135], index: 4, kind: input, shape index: {}]   ;;  %s5474_s5 = inlined_call_operand.vmem [shape: bf16[128,64], index: 5, kind: input, shape index: {}]   ;;  %s5475_s6 = inlined_call_operand.vmem [shape: bf16[128,64], index: 6, kind: input, shape index: {}]   ;;  %s5476_s7 = inlined_call_operand.vmem [shape: bf16[3,64,128], index: 7, kind: input, shape index: {}]   ;;  %s5477_s8 = inlined_call_operand.vmem [shape: f32[1,128], index: 8, kind: input, shape index: {}]   ;;  %s5478_s9 = inlined_call_operand.vmem [shape: bf16[32,71], index: 9, kind: input, shape index: {}]   ;;  %s5479_s10 = inlined_call_operand.vmem [shape: bf16[32,71], index: 10, kind: input, shape index: {}]   ;;  %s5480_s11 = inlined_call_operand.vmem [shape: bf16[128,64], index: 11, kind: input, shape index: {}]   ;;  %s5481_s12 = inlined_call_operand.vmem [shape: bf16[128,64], index: 12, kind: input, shape index: {}]   ;;  %s5482_s13 = inlined_call_operand.vmem [shape: bf16[4,64,512], index: 13, kind: input, shape index: {}]   ;;  %s5483_s14 = inlined_call_operand.vmem [shape: f32[1,512], index: 14, kind: input, shape index: {}]   ;;  %s5484_s15 = inlined_call_operand.vmem [shape: bf16[512,128], index: 15, kind: input, shape index: {}]   ;;  %s5485_s16 = inlined_call_operand.vmem [shape: f32[1,128], index: 16, kind: input, shape index: {}]   ;;  %s5486_s17 = inlined_call_operand.hbm [shape: f32[2,8,128], index: 17, kind: output, shape index: {}]  }
   0x1   :  { %5496 = sst [smem:[#allocation13_spill]] %s5469_s0 }
   0x2   :  { %5497 = sst [smem:[#allocation14_spill]] %s5470_s1 }
   0x3   :  { %5498 = sst [smem:[#allocation15_spill]] %s5471_s2 }
   0x4   :  { %5499 = sst [smem:[#allocation16_spill]] %s5472_s3 }
   0x5   :  { %22 = vsyncpa [#allocation4], 0 }
   0x6   :  { %24 = vsyncpa [#allocation4 + $0x1], 0  ;;  %s4351_s24 = smov 0   ;;  %s4353_s25 = smov 0  }
   0x7   :  { %s4355_s26 = smov 0   ;;  %s4357_s27 = smov 0  }
   0x8 LB: > { %5500 = sst [smem:[#allocation6_spill]] %s4246_s24  ;;  %s4372_s28 = sadd.s32 4294967295, %s4258_s27   ;;  %s4258_s27 = sphi %s4357_s27, %s5517_s27   ;;  %s4254_s26 = sphi %s4355_s26, %s5519_s26   ;;  %s4250_s25 = sphi %s4353_s25, %s5521_s25   ;;  %s4246_s24 = sphi %s4351_s24, %s5520_s24  }
   0x9   : > { %5501 = sst [smem:[#allocation7_spill]] %s4254_s26  ;;  %s3129_s29 = sadd.s32 4294967294, %s4258_s27  }
   0xa   : > { %5502 = sst [smem:[#allocation8_spill]] %s4258_s27  ;;  %s4376_s0 = sadd.s32 1, %s4258_s27  }
   0xb   : > { %5503 = sst [smem:[#allocation9_spill]] %s4376_s0  ;;  %s399_s30 = sadd.s32 1, %s4254_s26 }
   0xc   : > { %s396_s18 = ssub.s32 %s4258_s27, %s4376_s0  ;;  %p409_p0 = scmp.ne.s32.totalorder %s4254_s26, %s4250_s25 }
   0xd   : > { %p397_p1 = scmp.eq.s32.totalorder %s396_s18, 0  ;;  %p410_p2 = scmp.eq.s32.totalorder %s4372_s28, 1 }
   0xe   : > { %p415_p3 = scmp.ne.s32.totalorder %s4250_s25, %s4246_s24  ;;  %p416_p4 = scmp.eq.s32.totalorder %s3129_s29, 1 }
   0xf   : > { %s4387_s19 = scalar_select %p397_p1, %s4254_s26, %s399_s30  }
  0x10   : > { %p4389_p5 = por %p410_p2, %p409_p0  ;;  %p4393_p6 = por %p416_p4, %p415_p3 }
  0x11   : > { %5504 = sst [smem:[#allocation10_spill]] %s4387_s19  ;;  %p3132_p7 = scmp.ge.s32.totalorder %s4258_s27, 1 }
  0x12   : > { %s5505_s1 = scalar_select %p4389_p5, 1, 0 }
  0x13   : > { %s5507_s20 = scalar_select %p4393_p6, 1, 0 }
  0x14   : > { %5506 = sst [smem:[#allocation11_spill]] %s5505_s1  ;;  %p490_p8 = scmp.lt.s32.totalorder %s4258_s27, 3 }
  0x15   : > { %5508 = sst [smem:[#allocation12_spill]] %s5507_s20 }
  0x16   : > { %p491_p9 = pnand %p3132_p7, %p490_p8 }
  0x17   : > { %s5509_s23 = sld [smem:[#allocation14_spill]] (!%p491_p9)  ;;  %p542_p10 = scmp.lt.s32.totalorder (!%p491_p9), %s4372_s28, 1 }
  0x18   : > { %494 = sbr.rel (%p491_p9) target bundleno = 1605 (0x645), region = 88  ;;  %s5510_s22 = sld [smem:[#allocation13_spill]] (!%p491_p9) }
  0x19   : > { %s5511_s2 = sld [smem:[#allocation15_spill]] (!%p491_p9)  ;;  %s539_s24 = sand.u32 (!%p491_p9), 1, %s4250_s25  }
  0x1a   : > { %s5512_s3 = sld [smem:[#allocation16_spill]] (!%p491_p9) }
  0x1d   : > { %v3984_v0 = vld [vmem:[%s5509_s23 + $0x28] sm:$0xff]  ;;  %v3981_v1 = vld [vmem:[%s5509_s23 + $0x10] sm:$0xff]  ;;  %v3987_v2 = vld [vmem:[%s5509_s23 + $0x40] sm:$0xff]  ;;  %s543_s29 = scalar_select %p542_p10, %s4372_s28, 1  ;;  %vm631_vm0 = vcmask 392192   ;;  %vm1076_vm1 = vcmask 1042432  }
  0x1e   : > { %664 = vmatpush.bf16.msra.mxu0 %v3984_v0  ;;  %762 = vmatpush.bf16.msra.mxu1 %v3981_v1  ;;  %v3983_v3 = vld [vmem:[%s5509_s23 + $0x20] sm:$0xff]  ;;  %v3980_v4 = vld [vmem:[%s5509_s23 + $0x8] sm:$0xff]  ;;  %v3986_v5 = vld [vmem:[%s5509_s23 + $0x38] sm:$0xff]  ;;  %vm1077_vm2 = vcmask 1043456   ;;  %vm1060_vm3 = vcmask 56320   ;;  %vm1510_vm4 = vcmask 523264  }
  0x1f   : > { %893 = vmatpush.bf16.msra.mxu2 %v3987_v2  ;;  %s4152_s30 = smul.u32 144, %s543_s29  ;;  %v3982_v6 = vld [vmem:[%s5509_s23 + $0x18] sm:$0xff]  ;;  %v3979_v7 = vld [vmem:[%s5509_s23] sm:$0xff]  ;;  %v3985_v8 = vld [vmem:[%s5509_s23 + $0x30] sm:$0xff]  ;;  %vm1520_vm5 = vcmask 516096   ;;  %vm1856_vm6 = vcmask 580608  }
  0x20   : > { %s3976_s29 = sshll.u32 %s4372_s28, 3 }
  0x21   : > { %s4431_s1 = scalar_lea.vmem %s5510_s22, %s4152_s30  ;;  %s3065_s18 = scalar_lea.hbm %s5486_s17, %s3976_s29 }
  0x22   : > { %665 = vmatpush.bf16.msra.mxu0 %v3983_v3  ;;  %763 = vmatpush.bf16.msra.mxu1 %v3980_v4  ;;  %v580_v9 = vld [vmem:[%s4431_s1 + $0x1] sm:$0xff]  ;;  %v581_v10 = vld [vmem:[%s4431_s1 + $0x9] sm:$0xff]  ;;  %v582_v18 = vld [vmem:[%s4431_s1 + $0x11] sm:$0xff]  ;;  %s3069_s21 = sshll.u32 %s3065_s18, 4  ;;  %s3055_s22 = scalar_lea.sflag [#allocation4], %s539_s24  ;;  %s3070_s21 = int_to_ptr.hbm [resolvable:$true] %s3069_s21 }
  0x23   : > { %894 = vmatpush.bf16.msra.mxu2 %v3986_v5  ;;  %v548_v11 = vld [vmem:[%s4431_s1] sm:$0xff]  ;;  %v549_v12 = vld [vmem:[%s4431_s1 + $0x8] sm:$0xff]  ;;  %v597_v15 = vpack.c.bf16 %v581_v10, %v580_v9  ;;  %v550_v20 = vld [vmem:[%s4431_s1 + $0x10] sm:$0xff]  ;;  %s4210_s27 = sshra.s32 %s3070_s21, 4  ;;  %s4211_s27 = int_to_ptr.hbm [resolvable:$true] %s4210_s27 }
  0x24   : > { %v810_v13 = vld [vmem:[%s4431_s1 + $0x2] sm:$0xff]  ;;  %v811_v14 = vld [vmem:[%s4431_s1 + $0xa] sm:$0xff]  ;;  %v565_v16 = vpack.c.bf16 %v549_v12, %v548_v11  ;;  %v583_v19 = vld [vmem:[%s4431_s1 + $0x19] sm:$0xff]  ;;  %s4212_s28 = scalar_lea.hbm %s4211_s27, 8  ;;  %p4217_p0 = scmp.lt.s32.totalorder %s4211_s27, %s5486_s17 }
  0x25   : > { %v827_v17 = vpack.c.bf16 %v811_v14, %v810_v13  ;;  %v551_v21 = vld [vmem:[%s4431_s1 + $0x18] sm:$0xff]  ;;  %v598_v24 = vpack.c.bf16 %v583_v19, %v582_v18  ;;  %v584_v27 = vld [vmem:[%s4431_s1 + $0x21] sm:$0xff]  ;;  %v585_v28 = vld [vmem:[%s4431_s1 + $0x29] sm:$0xff]  ;;  %p4213_p11 = scmp.ne.s32.totalorder %s4211_s27, %s4212_s28 }
  0x26   : > { %666 = vmatpush.bf16.msra.mxu0 %v3982_v6  ;;  %764 = vmatpush.bf16.msra.mxu1 %v3979_v7  ;;  %v812_v22 = vld [vmem:[%s4431_s1 + $0x12] sm:$0xff]  ;;  %v813_v23 = vld [vmem:[%s4431_s1 + $0x1a] sm:$0xff]  ;;  %v566_v25 = vpack.c.bf16 %v551_v21, %v550_v20  ;;  %v553_v30 = vld [vmem:[%s4431_s1 + $0x28] sm:$0xff]  ;;  %v599_v33 = vpack.c.bf16 %v585_v28, %v584_v27 }
  0x27   : > { %895 = vmatpush.bf16.msra.mxu2 %v3985_v8  ;;  %v828_v26 = vpack.c.bf16 %v813_v23, %v812_v22  ;;  %v552_v29 = vld [vmem:[%s4431_s1 + $0x20] sm:$0xff]  ;;  %v815_v32 = vld [vmem:[%s4431_s1 + $0x2a] sm:$0xff]  ;;  %v555_v39 = vld [vmem:[%s4431_s1 + $0x38] sm:$0xff]  ;;  %p4214_p12 = pnand %p4213_p11, %p4389_p5 }
  0x28   : > { %v814_v31 = vld [vmem:[%s4431_s1 + $0x22] sm:$0xff]  ;;  %v567_v34 = vpack.c.bf16 %v553_v30, %v552_v29  ;;  %v586_v36 = vld [vmem:[%s4431_s1 + $0x31] sm:$0xff]  ;;  %v587_v37 = vld [vmem:[%s4431_s1 + $0x39] sm:$0xff] }
  0x29   : > { %3153 = vmatmul.msk.bf16.vlgmr.msra.gmra.mxu0 %vm631_vm0, %v597_v15  ;;  %3174 = vmatmul.msk.bf16.vlgmr.msra.gmra.mxu1 %vm631_vm0, %v565_v16  ;;  %v829_v35 = vpack.c.bf16 %v815_v32, %v814_v31  ;;  %v554_v38 = vld [vmem:[%s4431_s1 + $0x30] sm:$0xff]  ;;  %v817_v41 = vld [vmem:[%s4431_s1 + $0x3a] sm:$0xff]  ;;  %v600_v42 = vpack.c.bf16 %v587_v37, %v586_v36  ;;  %v557_v48 = vld [vmem:[%s4431_s1 + $0x48] sm:$0xff]  ;;  %p4215_p13 = pneg %p4214_p12 }
  0x2a   : > { %3201 = vmatmul.msk.bf16.vlgmr.msra.gmra.mxu2 %vm631_vm0, %v827_v17  ;;  %v816_v40 = vld [vmem:[%s4431_s1 + $0x32] sm:$0xff]  ;;  %v568_v43 = vpack.c.bf16 %v555_v39, %v554_v38  ;;  %v588_v45 = vld [vmem:[%s4431_s1 + $0x41] sm:$0xff]  ;;  %v589_v46 = vld [vmem:[%s4431_s1 + $0x49] sm:$0xff] }
  0x2b   : > { %v830_v44 = vpack.c.bf16 %v817_v41, %v816_v40  ;;  %v556_v47 = vld [vmem:[%s4431_s1 + $0x40] sm:$0xff]  ;;  %v819_v50 = vld [vmem:[%s4431_s1 + $0x4a] sm:$0xff]  ;;  %v601_v51 = vpack.c.bf16 %v589_v46, %v588_v45  ;;  %v559_v57 = vld [vmem:[%s4431_s1 + $0x58] sm:$0xff] }
  0x2c   : > { %v818_v49 = vld [vmem:[%s4431_s1 + $0x42] sm:$0xff]  ;;  %v569_v52 = vpack.c.bf16 %v557_v48, %v556_v47  ;;  %v590_v54 = vld [vmem:[%s4431_s1 + $0x51] sm:$0xff]  ;;  %v591_v55 = vld [vmem:[%s4431_s1 + $0x59] sm:$0xff] }
  0x2d   : > { %v831_v53 = vpack.c.bf16 %v819_v50, %v818_v49  ;;  %v558_v56 = vld [vmem:[%s4431_s1 + $0x50] sm:$0xff]  ;;  %v821_v59 = vld [vmem:[%s4431_s1 + $0x5a] sm:$0xff]  ;;  %v602_v60 = vpack.c.bf16 %v591_v55, %v590_v54  ;;  %v561_v2 = vld [vmem:[%s4431_s1 + $0x68] sm:$0xff] }
  0x2e   : > { %v820_v58 = vld [vmem:[%s4431_s1 + $0x52] sm:$0xff]  ;;  %v570_v61 = vpack.c.bf16 %v559_v57, %v558_v56  ;;  %v592_v63 = vld [vmem:[%s4431_s1 + $0x61] sm:$0xff]  ;;  %v593_v0 = vld [vmem:[%s4431_s1 + $0x69] sm:$0xff] }
  0x2f   : > { %v832_v62 = vpack.c.bf16 %v821_v59, %v820_v58  ;;  %v560_v1 = vld [vmem:[%s4431_s1 + $0x60] sm:$0xff]  ;;  %v823_v4 = vld [vmem:[%s4431_s1 + $0x6a] sm:$0xff]  ;;  %v603_v5 = vpack.c.bf16 %v593_v0, %v592_v63  ;;  %v563_v11 = vld [vmem:[%s4431_s1 + $0x78] sm:$0xff] }
  0x30   : > { %v822_v3 = vld [vmem:[%s4431_s1 + $0x62] sm:$0xff]  ;;  %v571_v6 = vpack.c.bf16 %v561_v2, %v560_v1  ;;  %v594_v8 = vld [vmem:[%s4431_s1 + $0x71] sm:$0xff]  ;;  %v595_v9 = vld [vmem:[%s4431_s1 + $0x79] sm:$0xff] }
  0x31   : > { %v833_v7 = vpack.c.bf16 %v823_v4, %v822_v3  ;;  %v562_v10 = vld [vmem:[%s4431_s1 + $0x70] sm:$0xff]  ;;  %v825_v13 = vld [vmem:[%s4431_s1 + $0x7a] sm:$0xff]  ;;  %v604_v14 = vpack.c.bf16 %v595_v9, %v594_v8  ;;  %v826_v19 = vld [vmem:[%s4431_s1 + $0x82] sm:$0x7f] }
  0x32   : > { %v824_v12 = vld [vmem:[%s4431_s1 + $0x72] sm:$0xff]  ;;  %v572_v15 = vpack.c.bf16 %v563_v11, %v562_v10  ;;  %v596_v17 = vld [vmem:[%s4431_s1 + $0x81] sm:$0x7f] }
  0x33   : > { %v834_v16 = vpack.c.bf16 %v825_v13, %v824_v12  ;;  %v564_v18 = vld [vmem:[%s4431_s1 + $0x80] sm:$0x7f]  ;;  %v605_v20 = vpack.c.bf16 %v596_v17, %v596_v17  ;;  %s3133_s1 = sshll.u32 %s539_s24, 3 }
  0x34   : > { %v573_v21 = vpack.c.bf16 %v564_v18, %v564_v18  ;;  %s541_s0 = scalar_lea.vmem [#allocation3], %s3133_s1  ;;  %s4216_s1 = scalar_lea.hbm %s5486_s17, 16 }
  0x35   : > { %s3067_s20 = sshll.u32 %s541_s0, 4  ;;  %p4218_p1 = scmp.lt.s32.totalorder %s4216_s1, %s4212_s28  ;;  %s3068_s20 = int_to_ptr.vmem [resolvable:$true] %s3067_s20 }
  0x37   : > { %p4219_p2 = por %p4218_p1, %p4217_p0 }
  0x39   : > { %3154 = vmatmul.msk.bf16.gmra.mxu0 %vm631_vm0, %v598_v24  ;;  %3175 = vmatmul.msk.bf16.gmra.mxu1 %vm631_vm0, %v566_v25  ;;  %v835_v24 = vpack.c.bf16 %v826_v19, %v826_v19  ;;  %p4220_p3 = pnand %p4219_p2, %p4215_p13 }
  0x3a   : > { %3202 = vmatmul.msk.bf16.gmra.mxu2 %vm631_vm0, %v828_v26 }
  0x49   : > { %3155 = vmatmul.msk.bf16.gmra.mxu0 %vm631_vm0, %v599_v33  ;;  %3176 = vmatmul.msk.bf16.gmra.mxu1 %vm631_vm0, %v567_v34 }
  0x4a   : > { %3203 = vmatmul.msk.bf16.gmra.mxu2 %vm631_vm0, %v829_v35 }
  0x59   : > { %3156 = vmatmul.msk.bf16.gmra.mxu0 %vm631_vm0, %v600_v42  ;;  %3177 = vmatmul.msk.bf16.gmra.mxu1 %vm631_vm0, %v568_v43 }
  0x5a   : > { %3204 = vmatmul.msk.bf16.gmra.mxu2 %vm631_vm0, %v830_v44 }
  0x69   : > { %3157 = vmatmul.msk.bf16.gmra.mxu0 %vm631_vm0, %v601_v51  ;;  %3178 = vmatmul.msk.bf16.gmra.mxu1 %vm631_vm0, %v569_v52 }
  0x6a   : > { %3205 = vmatmul.msk.bf16.gmra.mxu2 %vm631_vm0, %v831_v53 }
  0x79   : > { %3158 = vmatmul.msk.bf16.gmra.mxu0 %vm631_vm0, %v602_v60  ;;  %3179 = vmatmul.msk.bf16.gmra.mxu1 %vm631_vm0, %v570_v61 }
  0x7a   : > { %3206 = vmatmul.msk.bf16.gmra.mxu2 %vm631_vm0, %v832_v62 }
  0x89   : > { %3159 = vmatmul.msk.bf16.gmra.mxu0 %vm631_vm0, %v603_v5  ;;  %3180 = vmatmul.msk.bf16.gmra.mxu1 %vm631_vm0, %v571_v6 }
  0x8a   : > { %3207 = vmatmul.msk.bf16.gmra.mxu2 %vm631_vm0, %v833_v7 }
  0x99   : > { %3160 = vmatmul.msk.bf16.gmra.mxu0 %vm631_vm0, %v604_v14  ;;  %3181 = vmatmul.msk.bf16.gmra.mxu1 %vm631_vm0, %v572_v15 }
  0x9a   : > { %3208 = vmatmul.msk.bf16.gmra.mxu2 %vm631_vm0, %v834_v16 }
  0xa6   : > { %v668_v22 = vpop.f32.mrf.mxu0  ;;  %v766_v23 = vpop.f32.mrf.mxu1 }
  0xa7   : > { %v767_v25 = vadd.f32 %v766_v23, %v668_v22 }
  0xa9   : > { %3161 = vmatmul.msk.bf16.gmra.mxu0 %vm631_vm0, %v605_v20  ;;  %3182 = vmatmul.msk.bf16.gmra.mxu1 %vm631_vm0, %v573_v21  ;;  %v4544_v20 = vld [vmem:[%s5511_s2] ss:$0 sm:$0xff] }
  0xaa   : > { %3209 = vmatmul.msk.bf16.gmra.mxu2 %vm631_vm0, %v835_v24 }
  0xad   : > { %v897_v26 = vpop.f32.mrf.mxu2 }
  0xae   : > { %v4511_v27 = vadd.f32 %v897_v26, %v767_v25  ;;  %v4513_v28 = vpop.f32.mrf.mxu0  ;;  %v4515_v29 = vpop.f32.mrf.mxu1 }
  0xb5   : > { %v4517_v30 = vpop.f32.mrf.mxu2 }
  0xb6   : > { %v673_v31 = vpop.f32.mrf.mxu0  ;;  %v771_v32 = vpop.f32.mrf.mxu1 }
  0xb7   : > { %v772_v33 = vadd.f32 %v771_v32, %v673_v31 }
  0xbd   : > { %v902_v34 = vpop.f32.mrf.mxu2 }
  0xbe   : > { %v4519_v35 = vadd.f32 %v902_v34, %v772_v33  ;;  %v4521_v36 = vpop.f32.mrf.mxu0  ;;  %v4523_v37 = vpop.f32.mrf.mxu1 }
  0xc5   : > { %v4525_v38 = vpop.f32.mrf.mxu2 }
  0xc6   : > { %v678_v39 = vpop.f32.mrf.mxu0  ;;  %v776_v40 = vpop.f32.mrf.mxu1 }
  0xc7   : > { %v777_v41 = vadd.f32 %v776_v40, %v678_v39 }
  0xcd   : > { %v907_v42 = vpop.f32.mrf.mxu2 }
  0xce   : > { %v4527_v43 = vadd.f32 %v907_v42, %v777_v41  ;;  %v4529_v44 = vpop.f32.mrf.mxu0  ;;  %v4531_v45 = vpop.f32.mrf.mxu1 }
  0xd5   : > { %v4533_v46 = vpop.f32.mrf.mxu2 }
  0xd6   : > { %v683_v47 = vpop.f32.mrf.mxu0  ;;  %v781_v48 = vpop.f32.mrf.mxu1 }
  0xd7   : > { %v782_v49 = vadd.f32 %v781_v48, %v683_v47 }
  0xdd   : > { %v912_v50 = vpop.f32.mrf.mxu2 }
  0xde   : > { %v4535_v51 = vadd.f32 %v912_v50, %v782_v49  ;;  %v685_v52 = vpop.f32.mrf.mxu0  ;;  %v783_v53 = vpop.f32.mrf.mxu1 }
  0xe5   : > { %v4537_v54 = vpop.f32.mrf.mxu2 }
  0xe6   : > { %v688_v55 = vpop.f32.mrf.mxu0  ;;  %v786_v56 = vpop.f32.mrf.mxu1 }
  0xe7   : > { %v787_v57 = vadd.f32 %v786_v56, %v688_v55 }
  0xed   : > { %v917_v58 = vpop.f32.mrf.mxu2 }
  0xee   : > { %v4539_v59 = vadd.f32 %v917_v58, %v787_v57  ;;  %v690_v60 = vpop.f32.mrf.mxu0  ;;  %v788_v61 = vpop.f32.mrf.mxu1 }
  0xef   : > { %v789_v42 = vadd.f32 %v788_v61, %v690_v60 }
  0xf5   : > { %v919_v62 = vpop.f32.mrf.mxu2 }
  0xf6   : > { %v693_v63 = vpop.f32.mrf.mxu0  ;;  %v791_v0 = vpop.f32.mrf.mxu1  ;;  %v950_v56 = vadd.f32 %v919_v62, %v789_v42 }
  0xf7   : > { %v792_v23 = vadd.f32 %v791_v0, %v693_v63  ;;  %v784_v0 = vadd.f32 %v783_v53, %v685_v52  ;;  %v4260_v52 = vmov 65535  }
  0xf8   : > { %v1078_v53 = vsel %vm1076_vm1, 4294967295, %v4260_v52  ;;  %v3997_v52 = vld [vmem:[%s5512_s3 + $0x44] sm:$0x10] }
  0xfd   : > { %v922_v1 = vpop.f32.mrf.mxu2 }
  0xfe   : > { %v695_v2 = vpop.f32.mrf.mxu0  ;;  %v793_v3 = vpop.f32.mrf.mxu1  ;;  %v951_v47 = vadd.f32 %v922_v1, %v792_v23 }
  0xff   : > { %v794_v24 = vadd.f32 %v793_v3, %v695_v2 }
 0x100   : > { %v972_v3 = vadd.f32 %v4544_v20, %v951_v47 }
 0x105   : > { %v924_v4 = vpop.f32.mrf.mxu2 }
 0x106   : > { %v698_v5 = vpop.f32.mrf.mxu0  ;;  %v796_v6 = vpop.f32.mrf.mxu1  ;;  %v952_v39 = vadd.f32 %v924_v4, %v794_v24  ;;  %v769_v24 = vadd.f32 %v4515_v29, %v4513_v28 }
 0x107   : > { %v797_v17 = vadd.f32 %v796_v6, %v698_v5  ;;  %v948_v5 = vadd.f32 %v4537_v54, %v784_v0  ;;  %v971_v6 = vadd.f32 %v4544_v20, %v950_v56  ;;  %v3257_v56 = vld [vmem:[%s5473_s4] sm:$0xf]  ;;  %v3259_v0 = vld [vmem:[%s5473_s4 + $0x8] sm:$0xf0] }
 0x108   : > { %v973_v57 = vadd.f32 %v4544_v20, %v952_v39 }
 0x10a   : > { %v990_v62 = vmax.f32 %v973_v57, 0.0  ;;  %v3999_v57 = vld [vmem:[%s5473_s4 + $0x4] sm:$0xf0] }
 0x10d   : > { %v927_v7 = vpop.f32.mrf.mxu2 }
 0x10e   : > { %v700_v8 = vpop.f32.mrf.mxu0  ;;  %v798_v9 = vpop.f32.mrf.mxu1  ;;  %v953_v26 = vadd.f32 %v927_v7, %v797_v17 }
 0x10f   : > { %v799_v18 = vadd.f32 %v798_v9, %v700_v8  ;;  %v779_v9 = vadd.f32 %v4531_v45, %v4529_v44  ;;  %v774_v44 = vadd.f32 %v4523_v37, %v4521_v36  ;;  %v968_v45 = vadd.f32 %v4544_v20, %v4535_v51 }
 0x110   : > { %v974_v48 = vadd.f32 %v4544_v20, %v953_v26  ;;  %v966_v36 = vadd.f32 %v4544_v20, %v4527_v43  ;;  %v942_v51 = vadd.f32 %v4517_v30, %v769_v24  ;;  %v962_v43 = vadd.f32 %v4544_v20, %v4511_v27  ;;  %v3220_v27 = vld [vmem:[%s5512_s3 + $0x10] sm:$0xf]  ;;  %v3992_v24 = vld [vmem:[%s5512_s3 + $0x24] sm:$0xf] }
 0x111   : > { %v946_v54 = vadd.f32 %v4533_v46, %v779_v9  ;;  %v944_v46 = vadd.f32 %v4525_v38, %v774_v44  ;;  %v985_v37 = vmax.f32 %v968_v45, 0.0  ;;  %v3273_v9 = vld [vmem:[%s5473_s4 + $0x20] sm:$0xf]  ;;  %v4005_v44 = vld [vmem:[%s5473_s4 + $0x34] sm:$0xf0] }
 0x112   : > { %v991_v4 = vmax.f32 %v974_v48, 0.0  ;;  %v963_v28 = vadd.f32 %v4544_v20, %v942_v51  ;;  %v4004_v45 = vld [vmem:[%s5473_s4 + $0x34] sm:$0xf]  ;;  %v4007_v51 = vld [vmem:[%s5473_s4 + $0x44] sm:$0x10] }
 0x114   : > { %v980_v39 = vmax.f32 %v963_v28, 0.0 }
 0x115   : > { %v929_v10 = vpop.f32.mrf.mxu2 }
 0x116   : > { %v703_v11 = vpop.f32.mrf.mxu0  ;;  %v801_v12 = vpop.f32.mrf.mxu1  ;;  %v954_v21 = vadd.f32 %v929_v10, %v799_v18  ;;  %v970_v10 = vadd.f32 %v4544_v20, %v4539_v59 }
 0x117   : > { %v802_v14 = vadd.f32 %v801_v12, %v703_v11  ;;  %v989_v11 = vmax.f32 %v972_v3, 0.0  ;;  %v3236_v3 = vld [vmem:[%s5512_s3 + $0x30] sm:$0xf] }
 0x118   : > { %v975_v40 = vadd.f32 %v4544_v20, %v954_v21  ;;  %v987_v59 = vmax.f32 %v970_v10, 0.0  ;;  %v967_v21 = vadd.f32 %v4544_v20, %v946_v54  ;;  %v4003_v10 = vld [vmem:[%s5473_s4 + $0x24] sm:$0xf0]  ;;  %v3275_v54 = vld [vmem:[%s5473_s4 + $0x28] sm:$0xf0] }
 0x11a   : > { %v992_v63 = vmax.f32 %v975_v40, 0.0  ;;  %v984_v38 = vmax.f32 %v967_v21, 0.0  ;;  %v979_v40 = vmax.f32 %v962_v43, 0.0  ;;  %v3990_v21 = vld [vmem:[%s5512_s3 + $0x14] sm:$0xf] }
 0x11b   : > { %v4014_v43 = vld [vmem:[%s5474_s5 + $0x30] sm:$0xff] }
 0x11c   : > { %v1002_v7 = vpack.c.bf16 %v992_v63, %v991_v4  ;;  %v996_v42 = vpack.c.bf16 %v980_v39, %v979_v40  ;;  %v3998_v63 = vld [vmem:[%s5473_s4 + $0x4] sm:$0xf]  ;;  %v3995_v4 = vld [vmem:[%s5512_s3 + $0x34] sm:$0xf0]  ;;  %v3246_v40 = vld [vmem:[%s5512_s3 + $0x48] sm:$0x10] }
 0x11d   : > { %v932_v13 = vpop.f32.mrf.mxu2  ;;  %v3996_v39 = vld [vmem:[%s5512_s3 + $0x44] sm:$0xf] }
 0x11e   : > { %v705_v15 = vpop.f32.mrf.mxu0  ;;  %v803_v16 = vpop.f32.mrf.mxu1  ;;  %v955_v19 = vadd.f32 %v932_v13, %v802_v14  ;;  %v4560_v13 = vsel %vm1077_vm2, %v1078_v53, 0  ;;  %v969_v14 = vadd.f32 %v4544_v20, %v948_v5  ;;  %v4000_v5 = vld [vmem:[%s5473_s4 + $0x14] sm:$0xf] }
 0x11f   : > { %v804_v22 = vadd.f32 %v803_v16, %v705_v15  ;;  %v1001_v15 = vpack.c.bf16 %v990_v62, %v989_v11  ;;  %v988_v16 = vmax.f32 %v971_v6, 0.0  ;;  %v3267_v62 = vld [vmem:[%s5473_s4 + $0x18] sm:$0xf0]  ;;  %v4002_v11 = vld [vmem:[%s5473_s4 + $0x24] sm:$0xf] }
 0x120   : > { %v976_v31 = vadd.f32 %v4544_v20, %v955_v19  ;;  %v986_v23 = vmax.f32 %v969_v14, 0.0  ;;  %v3278_v14 = vor.u32 %v4002_v11, %v3275_v54 }
 0x122   : > { %v993_v49 = vmax.f32 %v976_v31, 0.0  ;;  %v999_v26 = vpack.c.bf16 %v986_v23, %v985_v37  ;;  %v964_v31 = vadd.f32 %v4544_v20, %v4519_v35  ;;  %v3212_v35 = vld [vmem:[%s5512_s3] sm:$0xf] }
 0x123   : > { %v3289_v37 = vld [vmem:[%s5473_s4 + $0x40] sm:$0xf] }
 0x125   : > { %v934_v25 = vpop.f32.mrf.mxu2 }
 0x126   : > { %v956_v32 = vadd.f32 %v934_v25, %v804_v22  ;;  %v708_v33 = vpop.f32.mrf.mxu0  ;;  %v806_v34 = vpop.f32.mrf.mxu1  ;;  %v1000_v22 = vpack.c.bf16 %v988_v16, %v987_v59  ;;  %v965_v25 = vadd.f32 %v4544_v20, %v944_v46  ;;  %v3214_v16 = vld [vmem:[%s5512_s3 + $0x8] sm:$0xf0] }
 0x127   : > { %v807_v55 = vadd.f32 %v806_v34, %v708_v33  ;;  %v981_v34 = vmax.f32 %v964_v31, 0.0  ;;  %v3291_v31 = vld [vmem:[%s5473_s4 + $0x48] sm:$0x10] }
 0x128   : > { %v977_v41 = vadd.f32 %v4544_v20, %v956_v32  ;;  %v983_v32 = vmax.f32 %v966_v36, 0.0  ;;  %v982_v33 = vmax.f32 %v965_v25, 0.0  ;;  %v3230_v36 = vld [vmem:[%s5512_s3 + $0x28] sm:$0xf0]  ;;  %v4006_v25 = vld [vmem:[%s5473_s4 + $0x44] sm:$0xf] }
 0x129   : > { %v3294_v28 = vor.u32 %v4006_v25, %v3291_v31 }
 0x12a   : > { %v994_v50 = vmax.f32 %v977_v41, 0.0  ;;  %v998_v29 = vpack.c.bf16 %v984_v38, %v983_v32  ;;  %v997_v30 = vpack.c.bf16 %v982_v33, %v981_v34  ;;  %v3989_v41 = vld [vmem:[%s5512_s3 + $0x4] sm:$0xf0]  ;;  %v3290_v38 = vor.u32 %v4007_v51, %v3289_v37  ;;  %v4015_v32 = vld [vmem:[%s5474_s5 + $0x38] sm:$0xff] }
 0x12b   : > { %v3213_v47 = vor.u32 %v3989_v41, %v3212_v35  ;;  %1368 = vmatpush.bf16.msrb.mxu2 %v4015_v32  ;;  %v3238_v33 = vld [vmem:[%s5512_s3 + $0x38] sm:$0xf0]  ;;  %v3249_v41 = vor.u32 %v3996_v39, %v3246_v40 }
 0x12c   : > { %v1003_v58 = vpack.c.bf16 %v994_v50, %v993_v49  ;;  %v3228_v49 = vld [vmem:[%s5512_s3 + $0x20] sm:$0xf]  ;;  %v3993_v50 = vld [vmem:[%s5512_s3 + $0x24] sm:$0xf0] }
 0x12d   : > { %v937_v2 = vpop.f32.mrf.mxu2 }
 0x12e   : > { %1083 = vmatpush.bf16.msra.mxu3 %v1003_v58  ;;  %1221 = vmatpush.bf16.msrb.mxu0 %v1003_v58  ;;  %v957_v60 = vadd.f32 %v937_v2, %v807_v55  ;;  %v710_v61 = vpop.f32.mrf.mxu0  ;;  %v808_v1 = vpop.f32.mrf.mxu1  ;;  %v3229_v55 = vor.u32 %v3993_v50, %v3228_v49  ;;  %v3258_v58 = vor.u32 %v3999_v57, %v3257_v56  ;;  %v4012_v49 = vld [vmem:[%s5474_s5 + $0x20] sm:$0xff]  ;;  %v4022_v50 = vld [vmem:[%s5475_s6 + $0x30] sm:$0xff] }
 0x12f   : > { %v3262_v2 = vor.u32 %v3998_v63, %v3259_v0  ;;  %v3265_v61 = vld [vmem:[%s5473_s4 + $0x10] sm:$0xf]  ;;  %v4001_v1 = vld [vmem:[%s5473_s4 + $0x14] sm:$0xf0]  ;;  %1369 = vmatpush.bf16.msrb.mxu2 %v4014_v43  ;;  %v4020_v57 = vld [vmem:[%s5475_s6 + $0x20] sm:$0xff] }
 0x130   : > { %v978_v8 = vadd.f32 %v4544_v20, %v957_v60  ;;  %v3991_v20 = vld [vmem:[%s5512_s3 + $0x14] sm:$0xf0]  ;;  %v3237_v60 = vor.u32 %v3995_v4, %v3236_v3  ;;  %v3266_v6 = vor.u32 %v4001_v1, %v3265_v61  ;;  %v4018_v3 = vld [vmem:[%s5475_s6 + $0x10] sm:$0xff]  ;;  %v4009_v4 = vld [vmem:[%s5474_s5 + $0x8] sm:$0xff] }
 0x131   : > { %v3221_v48 = vor.u32 %v3991_v20, %v3220_v27  ;;  %v4023_v20 = vld [vmem:[%s5475_s6 + $0x38] sm:$0xff]  ;;  %v4008_v1 = vld [vmem:[%s5474_s5] sm:$0xff] }
 0x132   : > { %1084 = vmatpush.bf16.msra.mxu3 %v1002_v7  ;;  %1222 = vmatpush.bf16.msrb.mxu0 %v1002_v7  ;;  %v995_v12 = vmax.f32 %v978_v8, 0.0  ;;  %v3270_v7 = vor.u32 %v4000_v5, %v3267_v62  ;;  %v3244_v8 = vld [vmem:[%s5512_s3 + $0x40] sm:$0xf]  ;;  %v4019_v63 = vld [vmem:[%s5475_s6 + $0x18] sm:$0xff] }
 0x133   : > { %v3245_v53 = vor.u32 %v3997_v52, %v3244_v8  ;;  %v4016_v5 = vld [vmem:[%s5475_s6] sm:$0xff] }
 0x134   : > { %v1004_v17 = vpack.c.bf16 %v995_v12, %v995_v12  ;;  %v3274_v12 = vor.u32 %v4003_v10, %v3273_v9 }
 0x135   : > { %v939_v18 = vpop.f32.mrf.mxu2 }
 0x136   : > { %1085 = vmatpush.bf16.msra.mxu3 %v1001_v15  ;;  %1223 = vmatpush.bf16.msrb.mxu0 %v1001_v15  ;;  %v1081_v19 = vand.u32 %v4560_v13, %v1004_v17  ;;  %v3988_v15 = vld [vmem:[%s5512_s3 + $0x4] sm:$0xf]  ;;  %v3281_v18 = vld [vmem:[%s5473_s4 + $0x30] sm:$0xf] }
 0x137   : > { %v3217_v17 = vor.u32 %v3988_v15, %v3214_v16  ;;  %v3282_v59 = vor.u32 %v4005_v44, %v3281_v18 }
 0x138   : > { %1262 = vmatpush.bf16.msrb.mxu1 %v1081_v19 }
 0x13a   : > { %1086 = vmatpush.bf16.msra.mxu3 %v1000_v22  ;;  %1224 = vmatpush.bf16.msrb.mxu0 %v1000_v22  ;;  %v3222_v22 = vld [vmem:[%s5512_s3 + $0x18] sm:$0xf0] }
 0x13b   : > { %3295 = vmatmul.msk.bf16.vlgmr.msrb.gmra.mxu1 %vm1060_vm3, %v3262_v2  ;;  %v3225_v23 = vor.u32 %v3990_v21, %v3222_v22  ;;  %v4010_v2 = vld [vmem:[%s5474_s5 + $0x10] sm:$0xff] }
 0x13e   : > { %1087 = vmatpush.bf16.msra.mxu3 %v999_v26  ;;  %1225 = vmatpush.bf16.msrb.mxu0 %v999_v26  ;;  %v3233_v26 = vor.u32 %v3992_v24, %v3230_v36 }
 0x142   : > { %1088 = vmatpush.bf16.msra.mxu3 %v998_v29  ;;  %1226 = vmatpush.bf16.msrb.mxu0 %v998_v29  ;;  %v3994_v29 = vld [vmem:[%s5512_s3 + $0x34] sm:$0xf] }
 0x143   : > { %v3241_v34 = vor.u32 %v3994_v29, %v3238_v33 }
 0x146   : > { %1089 = vmatpush.bf16.msra.mxu3 %v997_v30  ;;  %1227 = vmatpush.bf16.msrb.mxu0 %v997_v30 }
 0x14a   : > { %1090 = vmatpush.bf16.msra.mxu3 %v996_v42  ;;  %1228 = vmatpush.bf16.msrb.mxu0 %v996_v42 }
 0x14b   : > { %3296 = vmatmul.msk.bf16.gmra.mxu1 %vm1060_vm3, %v3270_v7 }
 0x14d   : > { %1091 = vmatmul.bf16.vlgmr.msra.gmra.mxu3 %v3213_v47  ;;  %1229 = vmatmul.bf16.vlgmr.msrb.gmra.mxu0 %v3258_v58  ;;  %v4013_v47 = vld [vmem:[%s5474_s5 + $0x28] sm:$0xff]  ;;  %v4011_v58 = vld [vmem:[%s5474_s5 + $0x18] sm:$0xff] }
 0x14e   : > { %1124 = vmatpush.bf16.msrb.mxu3 %v1081_v19  ;;  %v3283_v19 = vld [vmem:[%s5473_s4 + $0x38] sm:$0xf0]  ;;  %1370 = vmatpush.bf16.msrb.mxu2 %v4013_v47 }
 0x14f   : > { %v3286_v46 = vor.u32 %v4004_v45, %v3283_v19 }
 0x152   : > { %1466 = vmatpush.bf16.msra.mxu3 %v4023_v20  ;;  %1371 = vmatpush.bf16.msrb.mxu2 %v4012_v49 }
 0x156   : > { %1467 = vmatpush.bf16.msra.mxu3 %v4022_v50  ;;  %1372 = vmatpush.bf16.msrb.mxu2 %v4011_v58 }
 0x15a   : > { %1373 = vmatpush.bf16.msrb.mxu2 %v4010_v2 }
 0x15b   : > { %3297 = vmatmul.msk.bf16.gmra.mxu1 %vm1060_vm3, %v3278_v14 }
 0x15d   : > { %1096 = vmatmul.bf16.gmra.mxu3 %v3221_v48  ;;  %1234 = vmatmul.bf16.gmra.mxu0 %v3266_v6 }
 0x15e   : > { %1374 = vmatpush.bf16.msrb.mxu2 %v4009_v4 }
 0x162   : > { %1375 = vmatpush.bf16.msrb.mxu2 %v4008_v1 }
 0x16b   : > { %3298 = vmatmul.msk.bf16.gmra.mxu1 %vm1060_vm3, %v3286_v46 }
 0x16d   : > { %1101 = vmatmul.bf16.gmra.mxu3 %v3229_v55  ;;  %1239 = vmatmul.bf16.gmra.mxu0 %v3274_v12  ;;  %v4021_v55 = vld [vmem:[%s5475_s6 + $0x28] sm:$0xff] }
 0x16e   : > { %1468 = vmatpush.bf16.msra.mxu3 %v4021_v55 }
 0x172   : > { %1469 = vmatpush.bf16.msra.mxu3 %v4020_v57 }
 0x176   : > { %1470 = vmatpush.bf16.msra.mxu3 %v4019_v63 }
 0x17a   : > { %1471 = vmatpush.bf16.msra.mxu3 %v4018_v3 }
 0x17b   : > { %3299 = vmatmul.msk.bf16.gmra.mxu1 %vm1060_vm3, %v3294_v28 }
 0x17d   : > { %1106 = vmatmul.bf16.gmra.mxu3 %v3237_v60  ;;  %1244 = vmatmul.bf16.gmra.mxu0 %v3282_v59  ;;  %v4017_v60 = vld [vmem:[%s5475_s6 + $0x8] sm:$0xff] }
 0x17e   : > { %1472 = vmatpush.bf16.msra.mxu3 %v4017_v60 }
 0x182   : > { %1473 = vmatpush.bf16.msra.mxu3 %v4016_v5 }
 0x18d   : > { %1111 = vmatmul.bf16.gmra.mxu3 %v3245_v53  ;;  %1249 = vmatmul.bf16.gmra.mxu0 %v3290_v38 }
 0x19d   : > { %3250 = vmatmul.msk.bf16.vlgmr.msrb.gmra.mxu3 %vm1060_vm3, %v3217_v17 }
 0x1ad   : > { %3251 = vmatmul.msk.bf16.gmra.mxu3 %vm1060_vm3, %v3225_v23 }
 0x1b8   : > { %v1264_v62 = vpop.f32.mrf.mxu1 }
 0x1bd   : > { %3252 = vmatmul.msk.bf16.gmra.mxu3 %vm1060_vm3, %v3233_v26 }
 0x1c0   : > { %v1266_v52 = vpop.f32.mrf.mxu1 }
 0x1c8   : > { %v1269_v11 = vpop.f32.mrf.mxu1 }
 0x1ca   : > { %v1230_v6 = vpop.f32.mrf.mxu0 }
 0x1cb   : > { %v1265_v12 = vadd.f32 %v1264_v62, %v1230_v6 }
 0x1cd   : > { %3253 = vmatmul.msk.bf16.gmra.mxu3 %vm1060_vm3, %v3241_v34 }
 0x1d0   : > { %v1092_v30 = vpop.f32.mrf.mxu3  ;;  %v1271_v18 = vpop.f32.mrf.mxu1 }
 0x1d2   : > { %v1232_v8 = vpop.f32.mrf.mxu0 }
 0x1d3   : > { %v1267_v15 = vadd.f32 %v1266_v52, %v1232_v8 }
 0x1d8   : > { %v1094_v35 = vpop.f32.mrf.mxu3  ;;  %v1274_v21 = vpop.f32.mrf.mxu1 }
 0x1da   : > { %v1235_v9 = vpop.f32.mrf.mxu0 }
 0x1db   : > { %v1270_v22 = vadd.f32 %v1269_v11, %v1235_v9  ;;  %v4027_v9 = vld [vmem:[%s5476_s7 + $0x18] sm:$0xff]  ;;  %v4025_v11 = vld [vmem:[%s5476_s7 + $0x8] sm:$0xff] }
 0x1dc   : > { %1682 = vmatpush.bf16.msra.mxu1 %v4027_v9 }
 0x1dd   : > { %3254 = vmatmul.msk.bf16.gmra.mxu3 %vm1060_vm3, %v3249_v41 }
 0x1e0   : > { %v1097_v42 = vpop.f32.mrf.mxu3  ;;  %v1276_v31 = vpop.f32.mrf.mxu1 }
 0x1e2   : > { %v1237_v17 = vpop.f32.mrf.mxu0 }
 0x1e3   : > { %v1272_v36 = vadd.f32 %v1271_v18, %v1237_v17  ;;  %v4028_v17 = vld [vmem:[%s5476_s7 + $0x20] sm:$0xff] }
 0x1e4   : > { %v4032_v18 = vld [vmem:[%s5476_s7 + $0x40] sm:$0xff] }
 0x1e8   : > { %v1099_v27 = vpop.f32.mrf.mxu3  ;;  %v1279_v34 = vpop.f32.mrf.mxu1 }
 0x1ea   : > { %v1240_v46 = vpop.f32.mrf.mxu0 }
 0x1eb   : > { %v1275_v28 = vadd.f32 %v1274_v21, %v1240_v46 }
 0x1f0   : > { %v4723_v48 = vpop.f32.mrf.mxu3 }
 0x1f2   : > { %v1242_v38 = vpop.f32.mrf.mxu0 }
 0x1f8   : > { %v4734_v56 = vpop.f32.mrf.mxu3 }
 0x1fa   : > { %v1245_v33 = vpop.f32.mrf.mxu0 }
 0x1fb   : > { %v1280_v20 = vadd.f32 %v1279_v34, %v1245_v33 }
 0x200   : > { %v4745_v0 = vpop.f32.mrf.mxu3 }
 0x202   : > { %v1247_v47 = vpop.f32.mrf.mxu0 }
 0x208   : > { %v4759_v61 = vpop.f32.mrf.mxu3 }
 0x20a   : > { %v1250_v63 = vpop.f32.mrf.mxu0 }
 0x210   : > { %v4767_v7 = vpop.f32.mrf.mxu3 }
 0x212   : > { %v1252_v4 = vpop.f32.mrf.mxu0 }
 0x218   : > { %v4769_v53 = vpop.f32.mrf.mxu3 }
 0x220   : > { %v1126_v10 = vpop.f32.mrf.mxu3 }
 0x221   : > { %v1127_v54 = vadd.f32 %v1126_v10, %v1092_v30  ;;  %v1277_v30 = vadd.f32 %v1276_v31, %v1242_v38  ;;  %v4026_v10 = vld [vmem:[%s5476_s7 + $0x10] sm:$0xff] }
 0x222   : > { %1683 = vmatpush.bf16.msra.mxu1 %v4026_v10 }
 0x223   : > { %v1289_v44 = vmax.f32 %v1127_v54, %v1265_v12  ;;  %v4030_v12 = vld [vmem:[%s5476_s7 + $0x30] sm:$0xff]  ;;  %v4024_v54 = vld [vmem:[%s5476_s7] sm:$0xff] }
 0x226   : > { %1684 = vmatpush.bf16.msra.mxu1 %v4025_v11 }
 0x228   : > { %v1128_v14 = vpop.f32.mrf.mxu3 }
 0x229   : > { %v1129_v16 = vadd.f32 %v1128_v14, %v1094_v35  ;;  %v4034_v14 = vld [vmem:[%s5476_s7 + $0x50] sm:$0xff] }
 0x22a   : > { %1685 = vmatpush.bf16.msra.mxu1 %v4024_v54 }
 0x22b   : > { %v1290_v45 = vmax.f32 %v1129_v16, %v1267_v15  ;;  %v4029_v15 = vld [vmem:[%s5476_s7 + $0x28] sm:$0xff] }
 0x22c   : > { %v4033_v16 = vld [vmem:[%s5476_s7 + $0x48] sm:$0xff] }
 0x22d   : > { %v1299_v59 = vpack.c.bf16 %v1290_v45, %v1289_v44 }
 0x22f   : > { %1376 = vmatmul.bf16.vlgmr.msrb.gmra.mxu2 %v1299_v59  ;;  %1474 = vmatmul.bf16.vlgmr.msra.gmra.mxu3 %v1299_v59 }
 0x230   : > { %v1131_v19 = vpop.f32.mrf.mxu3 }
 0x231   : > { %v1132_v23 = vadd.f32 %v1131_v19, %v1097_v42 }
 0x233   : > { %v1291_v51 = vmax.f32 %v1132_v23, %v1270_v22 }
 0x238   : > { %v1133_v24 = vpop.f32.mrf.mxu3 }
 0x239   : > { %v1134_v37 = vadd.f32 %v1133_v24, %v1099_v27  ;;  %v1281_v27 = vpop.f32.mrf.mxu1 }
 0x23a   : > { %v1282_v55 = vadd.f32 %v1281_v27, %v1247_v47 }
 0x23b   : > { %v1292_v25 = vmax.f32 %v1134_v37, %v1272_v36 }
 0x23d   : > { %v1300_v26 = vpack.c.bf16 %v1292_v25, %v1291_v51 }
 0x23f   : > { %1381 = vmatmul.bf16.gmra.mxu2 %v1300_v26  ;;  %1479 = vmatmul.bf16.gmra.mxu3 %v1300_v26 }
 0x240   : > { %v1136_v32 = vpop.f32.mrf.mxu3 }
 0x241   : > { %v1137_v29 = vadd.f32 %v1136_v32, %v4723_v48  ;;  %v1284_v2 = vpop.f32.mrf.mxu1 }
 0x242   : > { %v1285_v1 = vadd.f32 %v1284_v2, %v1250_v63 }
 0x243   : > { %v1293_v40 = vmax.f32 %v1137_v29, %v1275_v28 }
 0x248   : > { %v1138_v43 = vpop.f32.mrf.mxu3 }
 0x249   : > { %v1139_v39 = vadd.f32 %v1138_v43, %v4734_v56  ;;  %v1286_v60 = vpop.f32.mrf.mxu1 }
 0x24a   : > { %v1287_v62 = vadd.f32 %v1286_v60, %v1252_v4 }
 0x24b   : > { %v1294_v35 = vmax.f32 %v1139_v39, %v1277_v30 }
 0x24d   : > { %v1301_v41 = vpack.c.bf16 %v1294_v35, %v1293_v40 }
 0x24f   : > { %1386 = vmatmul.bf16.gmra.mxu2 %v1301_v41  ;;  %1484 = vmatmul.bf16.gmra.mxu3 %v1301_v41 }
 0x250   : > { %v1141_v42 = vpop.f32.mrf.mxu3 }
 0x251   : > { %v1142_v49 = vadd.f32 %v1141_v42, %v4745_v0 }
 0x253   : > { %v1295_v57 = vmax.f32 %v1142_v49, %v1280_v20 }
 0x258   : > { %v1143_v50 = vpop.f32.mrf.mxu3 }
 0x259   : > { %v1144_v48 = vadd.f32 %v1143_v50, %v4759_v61 }
 0x25b   : > { %v1296_v58 = vmax.f32 %v1144_v48, %v1282_v55 }
 0x25d   : > { %v1302_v56 = vpack.c.bf16 %v1296_v58, %v1295_v57 }
 0x25f   : > { %1391 = vmatmul.bf16.gmra.mxu2 %v1302_v56  ;;  %1489 = vmatmul.bf16.gmra.mxu3 %v1302_v56 }
 0x260   : > { %v1146_v3 = vpop.f32.mrf.mxu3 }
 0x261   : > { %v1147_v5 = vadd.f32 %v1146_v3, %v4767_v7  ;;  %v4035_v7 = vld [vmem:[%s5476_s7 + $0x58] sm:$0xff] }
 0x262   : > { %1777 = vmatpush.bf16.msra.mxu2 %v4035_v7 }
 0x263   : > { %v1297_v8 = vmax.f32 %v1147_v5, %v1285_v1 }
 0x266   : > { %1778 = vmatpush.bf16.msra.mxu2 %v4034_v14 }
 0x268   : > { %v1148_v6 = vpop.f32.mrf.mxu3 }
 0x269   : > { %v1149_v0 = vadd.f32 %v1148_v6, %v4769_v53  ;;  %v4031_v53 = vld [vmem:[%s5476_s7 + $0x38] sm:$0xff] }
 0x26a   : > { %1610 = vmatpush.bf16.msra.mxu0 %v4031_v53  ;;  %1779 = vmatpush.bf16.msra.mxu2 %v4033_v16 }
 0x26b   : > { %v1298_v52 = vmax.f32 %v1149_v0, %v1287_v62 }
 0x26d   : > { %v1303_v61 = vpack.c.bf16 %v1298_v52, %v1297_v8 }
 0x26e   : > { %1611 = vmatpush.bf16.msra.mxu0 %v4030_v12  ;;  %1780 = vmatpush.bf16.msra.mxu2 %v4032_v18 }
 0x26f   : > { %1396 = vmatmul.bf16.gmra.mxu2 %v1303_v61  ;;  %1494 = vmatmul.bf16.gmra.mxu3 %v1303_v61 }
 0x272   : > { %1612 = vmatpush.bf16.msra.mxu0 %v4029_v15 }
 0x276   : > { %1613 = vmatpush.bf16.msra.mxu0 %v4028_v17 }
 0x2b2   : > { %v1377_v44 = vpop.f32.mrf.mxu2  ;;  %v1475_v45 = vpop.f32.mrf.mxu3 }
 0x2b3   : > { %v1500_v59 = vmax.f32 %v1377_v44, %v1475_v45 }
 0x2b5   : > { %1511 = vst.msk [vmem:[#allocation2] sm:$0xff] %vm1510_vm4, %v1500_v59 }
 0x2ba   : > { %v1379_v19 = vpop.f32.mrf.mxu2  ;;  %v1477_v46 = vpop.f32.mrf.mxu3 }
 0x2bb   : > { %v1501_v21 = vmax.f32 %v1379_v19, %v1477_v46 }
 0x2bc   : > { %v1522_v36 = vld [vmem:[#allocation2] sm:$0xff] }
 0x2bd   : > { %1512 = vst.msk [vmem:[#allocation2 + $0x8] sm:$0xff] %vm1510_vm4, %v1501_v21 }
 0x2c2   : > { %v1382_v22 = vpop.f32.mrf.mxu2  ;;  %v1480_v23 = vpop.f32.mrf.mxu3 }
 0x2c3   : > { %v1502_v24 = vmax.f32 %v1382_v22, %v1480_v23 }
 0x2c4   : > { %v1523_v37 = vld [vmem:[#allocation2 + $0x8] sm:$0xff] }
 0x2c5   : > { %1513 = vst.msk [vmem:[#allocation2 + $0x10] sm:$0xff] %vm1510_vm4, %v1502_v24  ;;  %v1531_v51 = vpack.c.bf16 %v1523_v37, %v1522_v36  ;;  %v1544_v31 = vld [vmem:[#allocation2 + $0x1] sm:$0xff] }
 0x2c6   : > { %v1711_v28 = vld [vmem:[#allocation2 + $0x2] sm:$0xff] }
 0x2c7   : > { %3409 = vmatmul.msk.bf16.vlgmr.msra.gmra.mxu1 %vm1510_vm4, %v1531_v51 }
 0x2ca   : > { %v1384_v25 = vpop.f32.mrf.mxu2  ;;  %v1482_v26 = vpop.f32.mrf.mxu3 }
 0x2cb   : > { %v1503_v38 = vmax.f32 %v1384_v25, %v1482_v26 }
 0x2cc   : > { %v1545_v32 = vld [vmem:[#allocation2 + $0x9] sm:$0xff] }
 0x2cd   : > { %v1712_v29 = vld [vmem:[#allocation2 + $0xa] sm:$0xff]  ;;  %1514 = vst.msk [vmem:[#allocation2 + $0x18] sm:$0xff] %vm1510_vm4, %v1503_v38  ;;  %v1553_v33 = vpack.c.bf16 %v1545_v32, %v1544_v31 }
 0x2ce   : > { %v1720_v43 = vpack.c.bf16 %v1712_v29, %v1711_v28  ;;  %v1524_v40 = vld [vmem:[#allocation2 + $0x10] sm:$0xff]  ;;  %v4194_v29 = vld [vmem:[%s5477_s8] ss:$0 sm:$0xff] }
 0x2cf   : > { %3388 = vmatmul.msk.bf16.vlgmr.msra.gmra.mxu0 %vm1510_vm4, %v1553_v33 }
 0x2d0   : > { %3438 = vmatmul.msk.bf16.vlgmr.msra.gmra.mxu2 %vm1510_vm4, %v1720_v43 }
 0x2d2   : > { %v1387_v34 = vpop.f32.mrf.mxu2  ;;  %v1485_v30 = vpop.f32.mrf.mxu3 }
 0x2d3   : > { %v1504_v39 = vmax.f32 %v1387_v34, %v1485_v30 }
 0x2d4   : > { %v1525_v35 = vld [vmem:[#allocation2 + $0x18] sm:$0xff] }
 0x2d5   : > { %1515 = vst.msk [vmem:[#allocation2 + $0x20] sm:$0xff] %vm1510_vm4, %v1504_v39  ;;  %v1532_v41 = vpack.c.bf16 %v1525_v35, %v1524_v40  ;;  %v1546_v20 = vld [vmem:[#allocation2 + $0x11] sm:$0xff] }
 0x2d6   : > { %v1713_v50 = vld [vmem:[#allocation2 + $0x12] sm:$0xff] }
 0x2d7   : > { %3410 = vmatmul.msk.bf16.gmra.mxu1 %vm1510_vm4, %v1532_v41 }
 0x2da   : > { %v1389_v42 = vpop.f32.mrf.mxu2  ;;  %v1487_v47 = vpop.f32.mrf.mxu3 }
 0x2db   : > { %v1505_v27 = vmax.f32 %v1389_v42, %v1487_v47 }
 0x2dc   : > { %v1547_v49 = vld [vmem:[#allocation2 + $0x19] sm:$0xff] }
 0x2dd   : > { %v1714_v55 = vld [vmem:[#allocation2 + $0x1a] sm:$0xff]  ;;  %1516 = vst.msk [vmem:[#allocation2 + $0x28] sm:$0xff] %vm1510_vm4, %v1505_v27  ;;  %v1554_v48 = vpack.c.bf16 %v1547_v49, %v1546_v20 }
 0x2de   : > { %v1721_v57 = vpack.c.bf16 %v1714_v55, %v1713_v50  ;;  %v1526_v56 = vld [vmem:[#allocation2 + $0x20] sm:$0xff] }
 0x2df   : > { %3389 = vmatmul.msk.bf16.gmra.mxu0 %vm1510_vm4, %v1554_v48 }
 0x2e0   : > { %3439 = vmatmul.msk.bf16.gmra.mxu2 %vm1510_vm4, %v1721_v57 }
 0x2e2   : > { %v1392_v58 = vpop.f32.mrf.mxu2  ;;  %v1490_v63 = vpop.f32.mrf.mxu3 }
 0x2e3   : > { %v1506_v2 = vmax.f32 %v1392_v58, %v1490_v63 }
 0x2e4   : > { %v1527_v3 = vld [vmem:[#allocation2 + $0x28] sm:$0xff] }
 0x2e5   : > { %1517 = vst.msk [vmem:[#allocation2 + $0x30] sm:$0xff] %vm1510_vm4, %v1506_v2  ;;  %v1533_v4 = vpack.c.bf16 %v1527_v3, %v1526_v56  ;;  %v1548_v6 = vld [vmem:[#allocation2 + $0x21] sm:$0xff] }
 0x2e6   : > { %v1715_v0 = vld [vmem:[#allocation2 + $0x22] sm:$0xff] }
 0x2e7   : > { %3411 = vmatmul.msk.bf16.gmra.mxu1 %vm1510_vm4, %v1533_v4 }
 0x2ea   : > { %v1394_v60 = vpop.f32.mrf.mxu2  ;;  %v1492_v1 = vpop.f32.mrf.mxu3 }
 0x2eb   : > { %v1507_v5 = vmax.f32 %v1394_v60, %v1492_v1 }
 0x2ec   : > { %v1549_v62 = vld [vmem:[#allocation2 + $0x29] sm:$0xff] }
 0x2ed   : > { %v1716_v8 = vld [vmem:[#allocation2 + $0x2a] sm:$0xff]  ;;  %1518 = vst.msk [vmem:[#allocation2 + $0x38] sm:$0xff] %vm1510_vm4, %v1507_v5  ;;  %v1555_v52 = vpack.c.bf16 %v1549_v62, %v1548_v6 }
 0x2ee   : > { %v1722_v61 = vpack.c.bf16 %v1716_v8, %v1715_v0  ;;  %v1528_v53 = vld [vmem:[#allocation2 + $0x30] sm:$0xff] }
 0x2ef   : > { %3390 = vmatmul.msk.bf16.gmra.mxu0 %vm1510_vm4, %v1555_v52 }
 0x2f0   : > { %3440 = vmatmul.msk.bf16.gmra.mxu2 %vm1510_vm4, %v1722_v61 }
 0x2f2   : > { %v1397_v9 = vpop.f32.mrf.mxu2  ;;  %v1495_v10 = vpop.f32.mrf.mxu3 }
 0x2f3   : > { %v1508_v7 = vmax.f32 %v1397_v9, %v1495_v10 }
 0x2f4   : > { %v1529_v11 = vld [vmem:[#allocation2 + $0x38] sm:$0xff] }
 0x2f5   : > { %1519 = vst.msk [vmem:[#allocation2 + $0x40] sm:$0xff] %vm1510_vm4, %v1508_v7  ;;  %v1534_v12 = vpack.c.bf16 %v1529_v11, %v1528_v53  ;;  %v1550_v16 = vld [vmem:[#allocation2 + $0x31] sm:$0xff] }
 0x2f6   : > { %v1717_v18 = vld [vmem:[#allocation2 + $0x32] sm:$0xff] }
 0x2f7   : > { %3412 = vmatmul.msk.bf16.gmra.mxu1 %vm1510_vm4, %v1534_v12 }
 0x2fa   : > { %v1399_v54 = vpop.f32.mrf.mxu2  ;;  %v1497_v14 = vpop.f32.mrf.mxu3 }
 0x2fb   : > { %v1509_v15 = vmax.f32 %v1399_v54, %v1497_v14 }
 0x2fc   : > { %v1551_v17 = vld [vmem:[#allocation2 + $0x39] sm:$0xff]  ;;  %v1552_v21 = vld [vmem:[#allocation2 + $0x41] sm:$0x7f] }
 0x2fd   : > { %v1718_v44 = vld [vmem:[#allocation2 + $0x3a] sm:$0xff]  ;;  %1521 = vst.msk [vmem:[#allocation2 + $0x48] sm:$0x1] %vm1520_vm5, %v1509_v15  ;;  %v1556_v45 = vpack.c.bf16 %v1551_v17, %v1550_v16  ;;  %v1557_v23 = vpack.c.bf16 %v1552_v21, %v1552_v21 }
 0x2fe   : > { %v1723_v59 = vpack.c.bf16 %v1718_v44, %v1717_v18  ;;  %v1530_v19 = vld [vmem:[#allocation2 + $0x40] sm:$0x7f] }
 0x2ff   : > { %3391 = vmatmul.msk.bf16.gmra.mxu0 %vm1510_vm4, %v1556_v45  ;;  %v1535_v46 = vpack.c.bf16 %v1530_v19, %v1530_v19 }
 0x300   : > { %3441 = vmatmul.msk.bf16.gmra.mxu2 %vm1510_vm4, %v1723_v59 }
 0x304   : > { %v1719_v22 = vld [vmem:[#allocation2 + $0x42] sm:$0x7f] }
 0x305   : > { %v1724_v24 = vpack.c.bf16 %v1719_v22, %v1719_v22 }
 0x307   : > { %3413 = vmatmul.msk.bf16.gmra.mxu1 %vm1510_vm4, %v1535_v46 }
 0x30f   : > { %3392 = vmatmul.msk.bf16.gmra.mxu0 %vm1510_vm4, %v1557_v23 }
 0x310   : > { %3442 = vmatmul.msk.bf16.gmra.mxu2 %vm1510_vm4, %v1724_v24 }
 0x344   : > { %v1687_v36 = vpop.f32.mrf.mxu1 }
 0x34c   : > { %v1615_v37 = vpop.f32.mrf.mxu0  ;;  %v1689_v51 = vpop.f32.mrf.mxu1 }
 0x34d   : > { %v1688_v25 = vadd.f32 %v1687_v36, %v1615_v37 }
 0x353   : > { %v1782_v26 = vpop.f32.mrf.mxu2 }
 0x354   : > { %v1806_v38 = vadd.f32 %v1782_v26, %v1688_v25  ;;  %v1617_v31 = vpop.f32.mrf.mxu0  ;;  %v1692_v32 = vpop.f32.mrf.mxu1 }
 0x355   : > { %v1690_v28 = vadd.f32 %v1689_v51, %v1617_v31 }
 0x356   : > { %v1819_v43 = vadd.f32 %v4194_v29, %v1806_v38 }
 0x358   : > { %v1828_v41 = vmax.f32 %v1819_v43, 0.0  ;;  %v4036_v43 = vld [vmem:[%s5478_s9] sm:$0xff] }
 0x35b   : > { %v1784_v33 = vpop.f32.mrf.mxu2 }
 0x35c   : > { %v1807_v34 = vadd.f32 %v1784_v33, %v1690_v28  ;;  %v1620_v30 = vpop.f32.mrf.mxu0  ;;  %v1694_v39 = vpop.f32.mrf.mxu1 }
 0x35d   : > { %v1693_v35 = vadd.f32 %v1692_v32, %v1620_v30  ;;  %v4047_v30 = vld [vmem:[%s5480_s11 + $0x38] sm:$0xff] }
 0x35e   : > { %v1820_v40 = vadd.f32 %v4194_v29, %v1807_v34  ;;  %v4039_v34 = vld [vmem:[%s5479_s10 + $0x8] sm:$0xff]  ;;  %1994 = vmatpush.bf16.msrb.mxu0 %v4047_v30  ;;  %v4079_v30 = vld [vmem:[%s5482_s13 + $0xb4] sm:$0xf0] }
 0x360   : > { %v1829_v42 = vmax.f32 %v1820_v40, 0.0  ;;  %v4046_v40 = vld [vmem:[%s5480_s11 + $0x30] sm:$0xff] }
 0x362   : > { %v4840_v47 = vpack.c.bf16 %v1829_v42, %v1828_v41  ;;  %1995 = vmatpush.bf16.msrb.mxu0 %v4046_v40  ;;  %v4045_v41 = vld [vmem:[%s5480_s11 + $0x28] sm:$0xff]  ;;  %v3571_v40 = vld [vmem:[%s5482_s13 + $0xb8] sm:$0xf0] }
 0x363   : > { %v1787_v27 = vpop.f32.mrf.mxu2  ;;  %v4053_v42 = vld [vmem:[%s5481_s12 + $0x28] sm:$0xff] }
 0x364   : > { %v1622_v20 = vpop.f32.mrf.mxu0  ;;  %v1697_v49 = vpop.f32.mrf.mxu1  ;;  %v1808_v50 = vadd.f32 %v1787_v27, %v1693_v35  ;;  %v4054_v35 = vld [vmem:[%s5481_s12 + $0x30] sm:$0xff]  ;;  %v4052_v27 = vld [vmem:[%s5481_s12 + $0x20] sm:$0xff] }
 0x365   : > { %v1695_v55 = vadd.f32 %v1694_v39, %v1622_v20  ;;  %v4055_v39 = vld [vmem:[%s5481_s12 + $0x38] sm:$0xff] }
 0x366   : > { %v1821_v57 = vadd.f32 %v4194_v29, %v1808_v50  ;;  %2077 = vmatpush.bf16.msrb.mxu1 %v4055_v39  ;;  %1996 = vmatpush.bf16.msrb.mxu0 %v4045_v41  ;;  %v4043_v20 = vld [vmem:[%s5480_s11 + $0x18] sm:$0xff]  ;;  %v4077_v39 = vld [vmem:[%s5482_s13 + $0xac] sm:$0xf] }
 0x367   : > { %v3574_v41 = vor.u32 %v4077_v39, %v3571_v40 }
 0x368   : > { %v1830_v3 = vmax.f32 %v1821_v57, 0.0  ;;  %v4041_v57 = vld [vmem:[%s5480_s11 + $0x8] sm:$0xff] }
 0x36a   : > { %2078 = vmatpush.bf16.msrb.mxu1 %v4054_v35 }
 0x36b   : > { %v1789_v48 = vpop.f32.mrf.mxu2 }
 0x36c   : > { %v1809_v58 = vadd.f32 %v1789_v48, %v1695_v55  ;;  %v1625_v63 = vpop.f32.mrf.mxu0  ;;  %v1699_v2 = vpop.f32.mrf.mxu1  ;;  %v4042_v55 = vld [vmem:[%s5480_s11 + $0x10] sm:$0xff] }
 0x36d   : > { %v1698_v59 = vadd.f32 %v1697_v49, %v1625_v63  ;;  %v4051_v49 = vld [vmem:[%s5481_s12 + $0x18] sm:$0xff]  ;;  %v4050_v48 = vld [vmem:[%s5481_s12 + $0x10] sm:$0xff] }
 0x36e   : > { %v1822_v56 = vadd.f32 %v4194_v29, %v1809_v58  ;;  %2079 = vmatpush.bf16.msrb.mxu1 %v4053_v42  ;;  %v4049_v58 = vld [vmem:[%s5481_s12 + $0x8] sm:$0xff]  ;;  %v3745_v42 = vld [vmem:[%s5482_s13 + $0x160] sm:$0xf] }
 0x370   : > { %v1831_v4 = vmax.f32 %v1822_v56, 0.0  ;;  %v4048_v56 = vld [vmem:[%s5481_s12] sm:$0xff] }
 0x372   : > { %v1838_v60 = vpack.c.bf16 %v1831_v4, %v1830_v3  ;;  %2080 = vmatpush.bf16.msrb.mxu1 %v4052_v27 }
 0x373   : > { %v1792_v1 = vpop.f32.mrf.mxu2 }
 0x374   : > { %v1627_v5 = vpop.f32.mrf.mxu0  ;;  %v1702_v6 = vpop.f32.mrf.mxu1  ;;  %v1810_v22 = vadd.f32 %v1792_v1, %v1698_v59  ;;  %v4070_v1 = vld [vmem:[%s5482_s13 + $0x6c] sm:$0xf0] }
 0x375   : > { %v1700_v18 = vadd.f32 %v1699_v2, %v1627_v5  ;;  %v4040_v2 = vld [vmem:[%s5480_s11] sm:$0xff] }
 0x376   : > { %v1823_v26 = vadd.f32 %v4194_v29, %v1810_v22  ;;  %2081 = vmatpush.bf16.msrb.mxu1 %v4051_v49  ;;  %v3593_v5 = vld [vmem:[%s5482_s13 + $0xe0] sm:$0xf]  ;;  %v4074_v49 = vld [vmem:[%s5482_s13 + $0x8c] sm:$0xf0] }
 0x378   : > { %v1832_v28 = vmax.f32 %v1823_v26, 0.0  ;;  %v3587_v26 = vld [vmem:[%s5482_s13 + $0xd8] sm:$0xf0] }
 0x37a   : > { %2082 = vmatpush.bf16.msrb.mxu1 %v4050_v48  ;;  %v4075_v48 = vld [vmem:[%s5482_s13 + $0x94] sm:$0xf0] }
 0x37b   : > { %v1794_v62 = vpop.f32.mrf.mxu2 }
 0x37c   : > { %v1630_v0 = vpop.f32.mrf.mxu0  ;;  %v1704_v8 = vpop.f32.mrf.mxu1  ;;  %v1811_v19 = vadd.f32 %v1794_v62, %v1700_v18  ;;  %v4086_v62 = vld [vmem:[%s5482_s13 + $0xec] sm:$0xf0] }
 0x37d   : > { %v1703_v14 = vadd.f32 %v1702_v6, %v1630_v0  ;;  %v3645_v0 = vld [vmem:[%s5482_s13 + $0x40] sm:$0xf] }
 0x37e   : > { %v1824_v37 = vadd.f32 %v4194_v29, %v1811_v19  ;;  %2083 = vmatpush.bf16.msrb.mxu1 %v4049_v58  ;;  %v3555_v58 = vld [vmem:[%s5482_s13 + $0x98] sm:$0xf0] }
 0x380   : > { %v1833_v31 = vmax.f32 %v1824_v37, 0.0 }
 0x382   : > { %v1839_v33 = vpack.c.bf16 %v1833_v31, %v1832_v28  ;;  %2084 = vmatpush.bf16.msrb.mxu1 %v4048_v56  ;;  %v4058_v28 = vld [vmem:[%s5482_s13 + $0xc] sm:$0xf0]  ;;  %v3729_v56 = vld [vmem:[%s5482_s13 + $0x140] sm:$0xf] }
 0x383   : > { %v1797_v52 = vpop.f32.mrf.mxu2 }
 0x384   : > { %v1632_v61 = vpop.f32.mrf.mxu0  ;;  %v1707_v9 = vpop.f32.mrf.mxu1  ;;  %v1812_v44 = vadd.f32 %v1797_v52, %v1703_v14  ;;  %v3594_v52 = vor.u32 %v4086_v62, %v3593_v5  ;;  %v3629_v14 = vld [vmem:[%s5482_s13 + $0x20] sm:$0xf]  ;;  %v3669_v5 = vld [vmem:[%s5482_s13 + $0x68] sm:$0xf]  ;;  %v4071_v62 = vld [vmem:[%s5482_s13 + $0x74] sm:$0xf0] }
 0x385   : > { %v1705_v11 = vadd.f32 %v1704_v8, %v1632_v61  ;;  %v4066_v8 = vld [vmem:[%s5482_s13 + $0x4c] sm:$0xf0]  ;;  %v3601_v61 = vld [vmem:[%s5482_s13 + $0xe8] sm:$0xf] }
 0x386   : > { %v1825_v23 = vadd.f32 %v4194_v29, %v1812_v44  ;;  %2222 = vmatpush.bf16.msrb.mxu2 %v3594_v52  ;;  %v3670_v52 = vor.u32 %v4071_v62, %v3669_v5  ;;  %v3647_v62 = vld [vmem:[%s5482_s13 + $0x50] sm:$0xf0] }
 0x388   : > { %v1834_v38 = vmax.f32 %v1825_v23, 0.0  ;;  %v3577_v23 = vld [vmem:[%s5482_s13 + $0xc0] sm:$0xf] }
 0x38b   : > { %v1799_v10 = vpop.f32.mrf.mxu2 }
 0x38c   : > { %v1635_v7 = vpop.f32.mrf.mxu0  ;;  %v1709_v53 = vpop.f32.mrf.mxu1  ;;  %v1813_v15 = vadd.f32 %v1799_v10, %v1705_v11  ;;  %v4085_v10 = vld [vmem:[%s5482_s13 + $0xec] sm:$0xf] }
 0x38d   : > { %v1708_v12 = vadd.f32 %v1707_v9, %v1635_v7  ;;  %v4087_v9 = vld [vmem:[%s5482_s13 + $0xf4] sm:$0xf0]  ;;  %v3646_v53 = vor.u32 %v4066_v8, %v3645_v0  ;;  %v4069_v0 = vld [vmem:[%s5482_s13 + $0x6c] sm:$0xf]  ;;  %v3671_v8 = vld [vmem:[%s5482_s13 + $0x78] sm:$0xf0] }
 0x38e   : > { %v1826_v46 = vadd.f32 %v4194_v29, %v1813_v15  ;;  %v3602_v11 = vor.u32 %v4087_v9, %v3601_v61  ;;  %v4062_v15 = vld [vmem:[%s5482_s13 + $0x2c] sm:$0xf0]  ;;  %v3674_v61 = vor.u32 %v4069_v0, %v3671_v8  ;;  %v3713_v9 = vld [vmem:[%s5482_s13 + $0x120] sm:$0xf]  ;;  %v3737_v0 = vld [vmem:[%s5482_s13 + $0x148] sm:$0xf] }
 0x390   : > { %v1835_v51 = vmax.f32 %v1826_v46, 0.0 }
 0x392   : > { %v1840_v32 = vpack.c.bf16 %v1835_v51, %v1834_v38  ;;  %v4083_v51 = vld [vmem:[%s5482_s13 + $0xd4] sm:$0xf0] }
 0x393   : > { %v1802_v54 = vpop.f32.mrf.mxu2 }
 0x394   : > { %v1814_v16 = vadd.f32 %v1802_v54, %v1708_v12  ;;  %v1637_v17 = vpop.f32.mrf.mxu0  ;;  %v3603_v12 = vld [vmem:[%s5482_s13 + $0xf8] sm:$0xf0] }
 0x395   : > { %v3606_v54 = vor.u32 %v4085_v10, %v3603_v12  ;;  %v4094_v10 = vld [vmem:[%s5482_s13 + $0x12c] sm:$0xf0]  ;;  %v3653_v12 = vld [vmem:[%s5482_s13 + $0x48] sm:$0xf] }
 0x396   : > { %v1827_v45 = vadd.f32 %v4194_v29, %v1814_v16  ;;  %v4038_v29 = vld [vmem:[%s5479_s10] sm:$0xff]  ;;  %v3630_v16 = vor.u32 %v4062_v15, %v3629_v14  ;;  %v4067_v14 = vld [vmem:[%s5482_s13 + $0x54] sm:$0xf0]  ;;  %v4065_v15 = vld [vmem:[%s5482_s13 + $0x4c] sm:$0xf] }
 0x398   : > { %v1836_v21 = vmax.f32 %v1827_v45, 0.0 }
 0x39a   : > { %v1841_v24 = vpack.c.bf16 %v1836_v21, %v1836_v21 }
 0x39b   : > { %v1804_v36 = vpop.f32.mrf.mxu2 }
 0x39c   : > { %v1864_v25 = vand.u32 %v1841_v24, %v4560_v13  ;;  %v4037_v13 = vld [vmem:[%s5478_s9 + $0x8] sm:$0xff]  ;;  %v4082_v24 = vld [vmem:[%s5482_s13 + $0xcc] sm:$0xf0] }
 0x39d   : > { %v3585_v36 = vld [vmem:[%s5482_s13 + $0xc8] sm:$0xf]  ;;  %v3578_v37 = vor.u32 %v4082_v24, %v3577_v23  ;;  %v4063_v23 = vld [vmem:[%s5482_s13 + $0x34] sm:$0xf0]  ;;  %v4061_v24 = vld [vmem:[%s5482_s13 + $0x2c] sm:$0xf] }
 0x39e   : > { %1869 = vmatpush.bf16.msrb.mxu3 %v1864_v25  ;;  %v3586_v38 = vor.u32 %v4083_v51, %v3585_v36  ;;  %v3639_v36 = vld [vmem:[%s5482_s13 + $0x38] sm:$0xf0] }
 0x39f   : > { %2223 = vmatpush.bf16.msrb.mxu2 %v3578_v37  ;;  %v3642_v51 = vor.u32 %v4061_v24, %v3639_v36  ;;  %v4056_v24 = vld [vmem:[%s5482_s13 + $0x4] sm:$0xf]  ;;  %v3615_v36 = vld [vmem:[%s5482_s13 + $0x10] sm:$0xf0] }
 0x3a2   : > { %1870 = vmatpush.bf16.msrb.mxu3 %v1840_v32 }
 0x3a6   : > { %1871 = vmatpush.bf16.msrb.mxu3 %v1839_v33 }
 0x3aa   : > { %1872 = vmatpush.bf16.msrb.mxu3 %v1838_v60 }
 0x3ae   : > { %1873 = vmatpush.bf16.msrb.mxu3 %v4840_v47 }
 0x3b1   : > { %3451 = vmatmul.msk.bf16.vlgmr.msrb.gmra.mxu3 %vm1856_vm6, %v4036_v43  ;;  %v3561_v43 = vld [vmem:[%s5482_s13 + $0xa0] sm:$0xf] }
 0x3b2   : > { %1908 = vmatpush.bf16.msra.mxu3 %v1864_v25  ;;  %v4081_v25 = vld [vmem:[%s5482_s13 + $0xcc] sm:$0xf] }
 0x3b3   : > { %v3590_v31 = vor.u32 %v4081_v25, %v3587_v26  ;;  %v4072_v25 = vld [vmem:[%s5482_s13 + $0x84] sm:$0xf]  ;;  %v3547_v26 = vld [vmem:[%s5482_s13 + $0x90] sm:$0xf0] }
 0x3b6   : > { %1909 = vmatpush.bf16.msra.mxu3 %v1840_v32  ;;  %v3613_v32 = vld [vmem:[%s5482_s13] sm:$0xf] }
 0x3ba   : > { %1910 = vmatpush.bf16.msra.mxu3 %v1839_v33  ;;  %v3614_v33 = vor.u32 %v4058_v28, %v3613_v32  ;;  %v3550_v32 = vor.u32 %v4072_v25, %v3547_v26  ;;  %v4089_v25 = vld [vmem:[%s5482_s13 + $0x10c] sm:$0xf]  ;;  %v3707_v26 = vld [vmem:[%s5482_s13 + $0x118] sm:$0xf0] }
 0x3be   : > { %1911 = vmatpush.bf16.msra.mxu3 %v1838_v60  ;;  %v3661_v60 = vld [vmem:[%s5482_s13 + $0x60] sm:$0xf] }
 0x3bf   : > { %v3662_v6 = vor.u32 %v4070_v1, %v3661_v60  ;;  %v4084_v60 = vld [vmem:[%s5482_s13 + $0xe4] sm:$0xf]  ;;  %v3595_v1 = vld [vmem:[%s5482_s13 + $0xf0] sm:$0xf0] }
 0x3c1   : > { %3452 = vmatmul.msk.bf16.gmra.mxu3 %vm1856_vm6, %v4037_v13  ;;  %2357 = vmatpush.bf16.msra.mxu1 %v3662_v6  ;;  %v4078_v13 = vld [vmem:[%s5482_s13 + $0xac] sm:$0xf0]  ;;  %v3598_v6 = vor.u32 %v4084_v60, %v3595_v1 }
 0x3c2   : > { %1912 = vmatpush.bf16.msra.mxu3 %v4840_v47  ;;  %v4044_v47 = vld [vmem:[%s5480_s11 + $0x20] sm:$0xff] }
 0x3c3   : > { %1997 = vmatpush.bf16.msrb.mxu0 %v4044_v47  ;;  %v4102_v47 = vld [vmem:[%s5482_s13 + $0x16c] sm:$0xf0] }
 0x3c4   : > { %v3746_v27 = vor.u32 %v4102_v47, %v3745_v42  ;;  %v3813_v42 = vld [vmem:[%s5482_s13 + $0x1c0] sm:$0xf]  ;;  %v4114_v47 = vld [vmem:[%s5482_s13 + $0x1cc] sm:$0xf0] }
 0x3c5   : > { %2358 = vmatpush.bf16.msra.mxu1 %v3646_v53  ;;  %v4080_v53 = vld [vmem:[%s5482_s13 + $0xc4] sm:$0xf] }
 0x3c6   : > { %2248 = vmatpush.bf16.msrb.mxu3 %v3602_v11  ;;  %v3579_v11 = vld [vmem:[%s5482_s13 + $0xd0] sm:$0xf0] }
 0x3c7   : > { %1998 = vmatpush.bf16.msrb.mxu0 %v4043_v20  ;;  %v3545_v20 = vld [vmem:[%s5482_s13 + $0x80] sm:$0xf] }
 0x3c9   : > { %2359 = vmatpush.bf16.msra.mxu1 %v3630_v16  ;;  %v3655_v16 = vld [vmem:[%s5482_s13 + $0x58] sm:$0xf0] }
 0x3ca   : > { %2249 = vmatpush.bf16.msrb.mxu3 %v3586_v38  ;;  %v3621_v38 = vld [vmem:[%s5482_s13 + $0x8] sm:$0xf] }
 0x3cb   : > { %1999 = vmatpush.bf16.msrb.mxu0 %v4042_v55  ;;  %v3546_v55 = vor.u32 %v4074_v49, %v3545_v20  ;;  %v4068_v20 = vld [vmem:[%s5482_s13 + $0x64] sm:$0xf]  ;;  %v3663_v49 = vld [vmem:[%s5482_s13 + $0x70] sm:$0xf0] }
 0x3cd   : > { %2360 = vmatpush.bf16.msra.mxu1 %v3614_v33  ;;  %v4057_v33 = vld [vmem:[%s5482_s13 + $0xc] sm:$0xf] }
 0x3cf   : > { %2000 = vmatpush.bf16.msrb.mxu0 %v4041_v57  ;;  %v4073_v57 = vld [vmem:[%s5482_s13 + $0x8c] sm:$0xf] }
 0x3d1   : > { %3461 = vmatmul.msk.bf16.vlgmr.msra.gmra.mxu3 %vm1856_vm6, %v4038_v29  ;;  %v3569_v29 = vld [vmem:[%s5482_s13 + $0xa8] sm:$0xf] }
 0x3d2   : > { %v3570_v35 = vor.u32 %v4079_v30, %v3569_v29  ;;  %v3829_v29 = vld [vmem:[%s5482_s13 + $0x1e0] sm:$0xf] }
 0x3d3   : > { %2001 = vmatpush.bf16.msrb.mxu0 %v4040_v2  ;;  %v3558_v2 = vor.u32 %v4073_v57, %v3555_v58  ;;  %v4103_v57 = vld [vmem:[%s5482_s13 + $0x174] sm:$0xf0]  ;;  %v4101_v58 = vld [vmem:[%s5482_s13 + $0x16c] sm:$0xf] }
 0x3d4   : > { %2250 = vmatpush.bf16.msrb.mxu3 %v3570_v35 }
 0x3d7   : > { %2261 = vmatpush.bf16.msra.mxu0 %v3606_v54  ;;  %v3582_v54 = vor.u32 %v4080_v53, %v3579_v11 }
 0x3db   : > { %2262 = vmatpush.bf16.msra.mxu0 %v3590_v31  ;;  %v4059_v31 = vld [vmem:[%s5482_s13 + $0x14] sm:$0xf0] }
 0x3dc   : > { %v3622_v28 = vor.u32 %v4059_v31, %v3621_v38  ;;  %v3618_v38 = vor.u32 %v4056_v24, %v3615_v36  ;;  %v4124_v24 = vld [vmem:[%s5484_s15 + $0x20] sm:$0xff]  ;;  %v4123_v36 = vld [vmem:[%s5484_s15 + $0x18] sm:$0xff] }
 0x3df   : > { %2263 = vmatpush.bf16.msra.mxu0 %v3574_v41 }
 0x3e1   : > { %3462 = vmatmul.msk.bf16.gmra.mxu3 %vm1856_vm6, %v4039_v34  ;;  %v3562_v34 = vor.u32 %v4078_v13, %v3561_v43  ;;  %v3623_v43 = vld [vmem:[%s5482_s13 + $0x18] sm:$0xf0] }
 0x3e2   : > { %v3626_v13 = vor.u32 %v4057_v33, %v3623_v43  ;;  %v3747_v33 = vld [vmem:[%s5482_s13 + $0x170] sm:$0xf0]  ;;  %v3837_v43 = vld [vmem:[%s5482_s13 + $0x1e8] sm:$0xf] }
 0x3e3   : > { %2224 = vmatpush.bf16.msrb.mxu2 %v3562_v34  ;;  %2264 = vmatpush.bf16.msra.mxu0 %v3558_v2  ;;  %v4118_v34 = vld [vmem:[%s5482_s13 + $0x1ec] sm:$0xf0] }
 0x3e4   : > { %v3830_v35 = vor.u32 %v4118_v34, %v3829_v29  ;;  %v4117_v29 = vld [vmem:[%s5482_s13 + $0x1ec] sm:$0xf]  ;;  %v3839_v34 = vld [vmem:[%s5482_s13 + $0x1f8] sm:$0xf0] }
 0x3e7   : > { %2225 = vmatpush.bf16.msrb.mxu2 %v3546_v55 }
 0x3eb   : > { %2235 = vmatpush.bf16.msra.mxu2 %v3598_v6  ;;  %v4064_v6 = vld [vmem:[%s5482_s13 + $0x44] sm:$0xf] }
 0x3ec   : > { %v3650_v53 = vor.u32 %v4064_v6, %v3647_v62 }
 0x3ef   : > { %2236 = vmatpush.bf16.msra.mxu2 %v3582_v54  ;;  %v4060_v54 = vld [vmem:[%s5482_s13 + $0x24] sm:$0xf] }
 0x434   : > { %v1875_v50 = vpop.f32.mrf.mxu3 }
 0x43c   : > { %v1877_v63 = vpop.f32.mrf.mxu3 }
 0x444   : > { %v1880_v3 = vpop.f32.mrf.mxu3 }
 0x44c   : > { %v1882_v4 = vpop.f32.mrf.mxu3 }
 0x454   : > { %v1914_v7 = vpop.f32.mrf.mxu3 }
 0x455   : > { %v1924_v18 = vmax.f32 %v1875_v50, %v1914_v7  ;;  %v3553_v50 = vld [vmem:[%s5482_s13 + $0x88] sm:$0xf]  ;;  %v3714_v7 = vor.u32 %v4094_v10, %v3713_v9  ;;  %v3739_v9 = vld [vmem:[%s5482_s13 + $0x158] sm:$0xf0]  ;;  %v3781_v10 = vld [vmem:[%s5482_s13 + $0x180] sm:$0xf] }
 0x45c   : > { %v1916_v17 = vpop.f32.mrf.mxu3 }
 0x45d   : > { %v1925_v44 = vmax.f32 %v1877_v63, %v1916_v17  ;;  %v3554_v63 = vor.u32 %v4075_v48, %v3553_v50  ;;  %v3654_v17 = vor.u32 %v4067_v14, %v3653_v12  ;;  %v3753_v50 = vld [vmem:[%s5482_s13 + $0x168] sm:$0xf]  ;;  %v3631_v14 = vld [vmem:[%s5482_s13 + $0x30] sm:$0xf0] }
 0x45e   : > { %v3754_v1 = vor.u32 %v4103_v57, %v3753_v50  ;;  %v4113_v50 = vld [vmem:[%s5482_s13 + $0x1cc] sm:$0xf] }
 0x45f   : > { %v1928_v45 = vpack.c.bf16 %v1925_v44, %v1924_v18  ;;  %2251 = vmatpush.bf16.msrb.mxu3 %v3554_v63  ;;  %v3658_v18 = vor.u32 %v4065_v15, %v3655_v16  ;;  %v3697_v44 = vld [vmem:[%s5482_s13 + $0x100] sm:$0xf]  ;;  %v3755_v63 = vld [vmem:[%s5482_s13 + $0x178] sm:$0xf0]  ;;  %v3721_v15 = vld [vmem:[%s5482_s13 + $0x128] sm:$0xf] }
 0x460   : > { %v3758_v5 = vor.u32 %v4101_v58, %v3755_v63 }
 0x461   : > { %2002 = vmatmul.bf16.vlgmr.msrb.gmra.mxu0 %v1928_v45  ;;  %2085 = vmatmul.bf16.vlgmr.msrb.gmra.mxu1 %v1928_v45  ;;  %v4090_v45 = vld [vmem:[%s5482_s13 + $0x10c] sm:$0xf0] }
 0x462   : > { %2510 = vmatpush.bf16.msrb.mxu1 %v3746_v27  ;;  %2396 = vmatpush.bf16.msrb.mxu0 %v3674_v61  ;;  %v3814_v27 = vor.u32 %v4114_v47, %v3813_v42  ;;  %v4097_v61 = vld [vmem:[%s5482_s13 + $0x14c] sm:$0xf]  ;;  %v3731_v42 = vld [vmem:[%s5482_s13 + $0x150] sm:$0xf0]  ;;  %v3821_v47 = vld [vmem:[%s5482_s13 + $0x1c8] sm:$0xf] }
 0x463   : > { %2383 = vmatpush.bf16.msra.mxu3 %v3670_v52  ;;  %v4099_v52 = vld [vmem:[%s5482_s13 + $0x154] sm:$0xf0]  ;;  %v3742_v12 = vor.u32 %v4097_v61, %v3739_v9  ;;  %v3789_v61 = vld [vmem:[%s5482_s13 + $0x188] sm:$0xf] }
 0x464   : > { %v1919_v59 = vpop.f32.mrf.mxu3  ;;  %v3738_v11 = vor.u32 %v4099_v52, %v3737_v0  ;;  %v3699_v52 = vld [vmem:[%s5482_s13 + $0x110] sm:$0xf0]  ;;  %v4107_v9 = vld [vmem:[%s5482_s13 + $0x194] sm:$0xf0] }
 0x465   : > { %v1926_v46 = vmax.f32 %v1880_v3, %v1919_v59  ;;  %v4098_v3 = vld [vmem:[%s5482_s13 + $0x14c] sm:$0xf0]  ;;  %v3698_v59 = vor.u32 %v4090_v45, %v3697_v44  ;;  %v4095_v44 = vld [vmem:[%s5482_s13 + $0x134] sm:$0xf0]  ;;  %v4093_v45 = vld [vmem:[%s5482_s13 + $0x12c] sm:$0xf] }
 0x466   : > { %2397 = vmatpush.bf16.msrb.mxu0 %v3658_v18 }
 0x467   : > { %2384 = vmatpush.bf16.msra.mxu3 %v3654_v17 }
 0x46a   : > { %2398 = vmatpush.bf16.msrb.mxu0 %v3642_v51  ;;  %v4091_v51 = vld [vmem:[%s5482_s13 + $0x114] sm:$0xf0] }
 0x46c   : > { %v1921_v19 = vpop.f32.mrf.mxu3 }
 0x46d   : > { %v1927_v21 = vmax.f32 %v1882_v4, %v1921_v19  ;;  %v3730_v4 = vor.u32 %v4098_v3, %v3729_v56  ;;  %v4076_v19 = vld [vmem:[%s5482_s13 + $0xa4] sm:$0xf]  ;;  %v3797_v56 = vld [vmem:[%s5482_s13 + $0x1a0] sm:$0xf]  ;;  %v4110_v3 = vld [vmem:[%s5482_s13 + $0x1ac] sm:$0xf0] }
 0x46e   : > { %2399 = vmatpush.bf16.msrb.mxu0 %v3626_v13  ;;  %v3798_v8 = vor.u32 %v4110_v3, %v3797_v56  ;;  %v4119_v13 = vld [vmem:[%s5482_s13 + $0x1f4] sm:$0xf0]  ;;  %v3715_v56 = vld [vmem:[%s5482_s13 + $0x130] sm:$0xf0]  ;;  %v3805_v3 = vld [vmem:[%s5482_s13 + $0x1a8] sm:$0xf] }
 0x46f   : > { %v1929_v22 = vpack.c.bf16 %v1927_v21, %v1926_v46  ;;  %2511 = vmatpush.bf16.msrb.mxu1 %v3730_v4  ;;  %v3563_v46 = vld [vmem:[%s5482_s13 + $0xb0] sm:$0xf0]  ;;  %v3637_v21 = vld [vmem:[%s5482_s13 + $0x28] sm:$0xf]  ;;  %v3666_v4 = vor.u32 %v4068_v20, %v3663_v49  ;;  %v4115_v49 = vld [vmem:[%s5482_s13 + $0x1d4] sm:$0xf0] }
 0x470   : > { %v3638_v37 = vor.u32 %v4063_v23, %v3637_v21  ;;  %v3822_v58 = vor.u32 %v4115_v49, %v3821_v47  ;;  %v4140_v47 = vld [vmem:[%s5484_s15 + $0xa0] sm:$0xff] }
 0x471   : > { %2007 = vmatmul.bf16.gmra.mxu0 %v1929_v22  ;;  %2090 = vmatmul.bf16.gmra.mxu1 %v1929_v22  ;;  %v3566_v22 = vor.u32 %v4076_v19, %v3563_v46  ;;  %v3634_v46 = vor.u32 %v4060_v54, %v3631_v14  ;;  %v4116_v54 = vld [vmem:[%s5482_s13 + $0x1e4] sm:$0xf]  ;;  %v3831_v14 = vld [vmem:[%s5482_s13 + $0x1f0] sm:$0xf0] }
 0x472   : > { %2385 = vmatpush.bf16.msra.mxu3 %v3638_v37  ;;  %v3705_v37 = vld [vmem:[%s5482_s13 + $0x108] sm:$0xf] }
 0x473   : > { %2512 = vmatpush.bf16.msrb.mxu1 %v3714_v7  ;;  %2237 = vmatpush.bf16.msra.mxu2 %v3566_v22  ;;  %v4106_v7 = vld [vmem:[%s5482_s13 + $0x18c] sm:$0xf0]  ;;  %v3722_v22 = vor.u32 %v4095_v44, %v3721_v15  ;;  %v3706_v31 = vor.u32 %v4091_v51, %v3705_v37  ;;  %v3834_v15 = vor.u32 %v4116_v54, %v3831_v14  ;;  %v4108_v44 = vld [vmem:[%s5482_s13 + $0x1a4] sm:$0xf]  ;;  %v4131_v14 = vld [vmem:[%s5484_s15 + $0x58] sm:$0xff] }
 0x474   : > { %v3782_v18 = vor.u32 %v4106_v7, %v3781_v10  ;;  %v4105_v10 = vld [vmem:[%s5482_s13 + $0x18c] sm:$0xf]  ;;  %v3791_v7 = vld [vmem:[%s5482_s13 + $0x198] sm:$0xf0]  ;;  %v4122_v37 = vld [vmem:[%s5484_s15 + $0x10] sm:$0xff] }
 0x476   : > { %2386 = vmatpush.bf16.msra.mxu3 %v3622_v28  ;;  %v4100_v28 = vld [vmem:[%s5482_s13 + $0x164] sm:$0xf] }
 0x477   : > { %2513 = vmatpush.bf16.msrb.mxu1 %v3698_v59  ;;  %2238 = vmatpush.bf16.msra.mxu2 %v3550_v32  ;;  %v3723_v59 = vld [vmem:[%s5482_s13 + $0x138] sm:$0xf0]  ;;  %v3710_v32 = vor.u32 %v4089_v25, %v3707_v26  ;;  %v4121_v25 = vld [vmem:[%s5484_s15 + $0x8] sm:$0xff] }
 0x478   : > { %v3726_v23 = vor.u32 %v4093_v45, %v3723_v59  ;;  %v3799_v45 = vld [vmem:[%s5482_s13 + $0x1b0] sm:$0xf0]  ;;  %v4151_v26 = vld [vmem:[%s5484_s15 + $0xf8] sm:$0xff] }
 0x479   : > { %v3802_v59 = vor.u32 %v4108_v44, %v3799_v45  ;;  %v4129_v45 = vld [vmem:[%s5484_s15 + $0x48] sm:$0xff] }
 0x4de   : > { %v2003_v30 = vpop.f32.mrf.mxu0  ;;  %v2086_v39 = vpop.f32.mrf.mxu1 }
 0x4df   : > { %v2096_v40 = vmax.f32 %v2003_v30, %v2086_v39  ;;  %v3750_v30 = vor.u32 %v4100_v28, %v3747_v33  ;;  %v3838_v39 = vor.u32 %v4119_v13, %v3837_v43  ;;  %v4149_v43 = vld [vmem:[%s5484_s15 + $0xe8] sm:$0xff]  ;;  %v4142_v13 = vld [vmem:[%s5484_s15 + $0xb0] sm:$0xff] }
 0x4e1   : > { %v5103_v41 = vpack.c.bf16 %v2096_v40, %v2096_v40  ;;  %v3842_v40 = vor.u32 %v4117_v29, %v3839_v34  ;;  %v4148_v29 = vld [vmem:[%s5484_s15 + $0xe0] sm:$0xff] }
 0x4e3   : > { %3675 = vmatmul.msk.bf16.vlgmr.msra.gmra.mxu1 %vm1510_vm4, %v5103_v41 }
 0x4e4   : > { %2667 = vmatpush.bf16.msra.mxu1 %v3830_v35  ;;  %v4096_v35 = vld [vmem:[%s5482_s13 + $0x144] sm:$0xf] }
 0x4e6   : > { %v2005_v55 = vpop.f32.mrf.mxu0  ;;  %v2088_v48 = vpop.f32.mrf.mxu1 }
 0x4e7   : > { %v2097_v2 = vmax.f32 %v2005_v55, %v2088_v48  ;;  %v3823_v55 = vld [vmem:[%s5482_s13 + $0x1d8] sm:$0xf0]  ;;  %v3734_v48 = vor.u32 %v4096_v35, %v3731_v42 }
 0x4e8   : > { %2668 = vmatpush.bf16.msra.mxu1 %v3814_v27  ;;  %v3826_v63 = vor.u32 %v4113_v50, %v3823_v55  ;;  %v4147_v42 = vld [vmem:[%s5484_s15 + $0xd8] sm:$0xff] }
 0x4e9   : > { %v5137_v60 = vpack.c.bf16 %v2097_v2, %v2097_v2  ;;  %v4092_v2 = vld [vmem:[%s5482_s13 + $0x124] sm:$0xf]  ;;  %v4135_v50 = vld [vmem:[%s5484_s15 + $0x78] sm:$0xff] }
 0x4ea   : > { %v4139_v55 = vld [vmem:[%s5484_s15 + $0x98] sm:$0xff] }
 0x4eb   : > { %3607 = vmatmul.msk.bf16.vlgmr.msrb.gmra.mxu2 %vm1510_vm4, %v5137_v60  ;;  %3609 = vmatmul.msk.bf16.vlgmr.msrb.gmra.mxu3 %vm1510_vm4, %v5137_v60 }
 0x4ec   : > { %3610 = vmatmul.msk.bf16.vlgmr.msra.gmra.mxu0 %vm1510_vm4, %v5137_v60  ;;  %2370 = vmatpush.bf16.msrb.mxu2 %v3666_v4  ;;  %v4111_v4 = vld [vmem:[%s5482_s13 + $0x1b4] sm:$0xf0] }
 0x4ed   : > { %2536 = vmatpush.bf16.msrb.mxu3 %v3754_v1  ;;  %2549 = vmatpush.bf16.msra.mxu0 %v3758_v5  ;;  %v3807_v1 = vld [vmem:[%s5482_s13 + $0x1b8] sm:$0xf0]  ;;  %v3718_v5 = vor.u32 %v4092_v2, %v3715_v56  ;;  %v3806_v62 = vor.u32 %v4111_v4, %v3805_v3  ;;  %v4134_v2 = vld [vmem:[%s5484_s15 + $0x70] sm:$0xff]  ;;  %v5399_v3 = vld [vmem:[%s5483_s14] sm:$0xf] }
 0x4ee   : > { %v2008_v16 = vpop.f32.mrf.mxu0  ;;  %v2091_v17 = vpop.f32.mrf.mxu1  ;;  %2669 = vmatpush.bf16.msra.mxu1 %v3798_v8  ;;  %v4088_v8 = vld [vmem:[%s5482_s13 + $0x104] sm:$0xf]  ;;  %v4138_v56 = vld [vmem:[%s5484_s15 + $0x90] sm:$0xff] }
 0x4ef   : > { %v2098_v19 = vmax.f32 %v2008_v16, %v2091_v17  ;;  %v4112_v16 = vld [vmem:[%s5482_s13 + $0x1c4] sm:$0xf]  ;;  %v3815_v17 = vld [vmem:[%s5482_s13 + $0x1d0] sm:$0xf0] }
 0x4f0   : > { %2371 = vmatpush.bf16.msrb.mxu2 %v3650_v53  ;;  %v3702_v53 = vor.u32 %v4088_v8, %v3699_v52  ;;  %v4144_v4 = vld [vmem:[%s5484_s15 + $0xc0] sm:$0xff] }
 0x4f1   : > { %v5187_v21 = vpack.c.bf16 %v2098_v19, %v2098_v19  ;;  %2537 = vmatpush.bf16.msrb.mxu3 %v3738_v11  ;;  %2550 = vmatpush.bf16.msra.mxu0 %v3742_v12  ;;  %v3790_v11 = vor.u32 %v4107_v9, %v3789_v61  ;;  %v3794_v12 = vor.u32 %v4105_v10, %v3791_v7  ;;  %v3783_v19 = vld [vmem:[%s5482_s13 + $0x190] sm:$0xf0]  ;;  %v4132_v10 = vld [vmem:[%s5484_s15 + $0x60] sm:$0xff] }
 0x4f2   : > { %2670 = vmatpush.bf16.msra.mxu1 %v3782_v18  ;;  %v3818_v18 = vor.u32 %v4112_v16, %v3815_v17  ;;  %v4136_v7 = vld [vmem:[%s5484_s15 + $0x80] sm:$0xff]  ;;  %v4130_v17 = vld [vmem:[%s5484_s15 + $0x50] sm:$0xff] }
 0x4f3   : > { %3759 = vmatmul.msk.bf16.vlgmr.msrb.gmra.mxu1 %vm1510_vm4, %v5187_v21 }
 0x4f4   : > { %2372 = vmatpush.bf16.msrb.mxu2 %v3634_v46 }
 0x4f5   : > { %2538 = vmatpush.bf16.msrb.mxu3 %v3722_v22  ;;  %2551 = vmatpush.bf16.msra.mxu0 %v3726_v23  ;;  %v4127_v22 = vld [vmem:[%s5484_s15 + $0x38] sm:$0xff]  ;;  %v4126_v23 = vld [vmem:[%s5484_s15 + $0x30] sm:$0xff] }
 0x4f6   : > { %v2010_v27 = vpop.f32.mrf.mxu0  ;;  %v2093_v20 = vpop.f32.mrf.mxu1  ;;  %3001 = vmatpush.bf16.msrb.mxu1 %v4127_v22 }
 0x4f7   : > { %v2099_v57 = vmax.f32 %v2010_v27, %v2093_v20  ;;  %v4146_v27 = vld [vmem:[%s5484_s15 + $0xd0] sm:$0xff] }
 0x4f8   : > { %2373 = vmatpush.bf16.msrb.mxu2 %v3618_v38  ;;  %v4120_v38 = vld [vmem:[%s5484_s15] sm:$0xff] }
 0x4f9   : > { %2539 = vmatpush.bf16.msrb.mxu3 %v3706_v31  ;;  %2552 = vmatpush.bf16.msra.mxu0 %v3710_v32  ;;  %v2562_v6 = vpack.c.bf16 %v2099_v57, %v2099_v57  ;;  %v4150_v31 = vld [vmem:[%s5484_s15 + $0xf0] sm:$0xff]  ;;  %v4143_v32 = vld [vmem:[%s5484_s15 + $0xb8] sm:$0xff] }
 0x4fa   : > { %3002 = vmatpush.bf16.msrb.mxu1 %v4126_v23 }
 0x4fb   : > { %3608 = vmatmul.msk.bf16.vlgmr.msra.gmra.mxu2 %vm1510_vm4, %v5137_v60  ;;  %3677 = vmatmul.msk.bf16.vlgmr.msra.gmra.mxu3 %vm1510_vm4, %v5103_v41  ;;  %v4109_v60 = vld [vmem:[%s5482_s13 + $0x1ac] sm:$0xf] }
 0x4fc   : > { %3678 = vmatmul.msk.bf16.vlgmr.msrb.gmra.mxu0 %vm1510_vm4, %v5103_v41  ;;  %2523 = vmatpush.bf16.msra.mxu2 %v3750_v30  ;;  %v3810_v0 = vor.u32 %v4109_v60, %v3807_v1 }
 0x4fd   : > { %2693 = vmatpush.bf16.msra.mxu3 %v3838_v39  ;;  %2706 = vmatpush.bf16.msrb.mxu0 %v3842_v40  ;;  %v4141_v39 = vld [vmem:[%s5484_s15 + $0xa8] sm:$0xff] }
 0x500   : > { %2524 = vmatpush.bf16.msra.mxu2 %v3734_v48 }
 0x501   : > { %2694 = vmatpush.bf16.msra.mxu3 %v3822_v58  ;;  %2707 = vmatpush.bf16.msrb.mxu0 %v3826_v63  ;;  %v4145_v58 = vld [vmem:[%s5484_s15 + $0xc8] sm:$0xff] }
 0x503   : > { %3843 = vmatmul.msk.bf16.vlgmr.msra.gmra.mxu1 %vm1510_vm4, %v2562_v6 }
 0x504   : > { %2525 = vmatpush.bf16.msra.mxu2 %v3718_v5 }
 0x505   : > { %2695 = vmatpush.bf16.msra.mxu3 %v3806_v62  ;;  %2708 = vmatpush.bf16.msrb.mxu0 %v3810_v0  ;;  %v4133_v62 = vld [vmem:[%s5484_s15 + $0x68] sm:$0xff] }
 0x506   : > { %v4137_v0 = vld [vmem:[%s5484_s15 + $0x88] sm:$0xff] }
 0x508   : > { %2526 = vmatpush.bf16.msra.mxu2 %v3702_v53 }
 0x509   : > { %2696 = vmatpush.bf16.msra.mxu3 %v3790_v11  ;;  %2709 = vmatpush.bf16.msrb.mxu0 %v3794_v12 }
 0x50b   : > { %3676 = vmatmul.msk.bf16.vlgmr.msrb.gmra.mxu2 %vm1510_vm4, %v5103_v41  ;;  %3761 = vmatmul.msk.bf16.vlgmr.msrb.gmra.mxu3 %vm1510_vm4, %v5187_v21  ;;  %v4104_v41 = vld [vmem:[%s5482_s13 + $0x184] sm:$0xf] }
 0x50c   : > { %3762 = vmatmul.msk.bf16.vlgmr.msra.gmra.mxu0 %vm1510_vm4, %v5187_v21  ;;  %2680 = vmatpush.bf16.msrb.mxu2 %v3834_v15  ;;  %v3786_v46 = vor.u32 %v4104_v41, %v3783_v19  ;;  %v4128_v41 = vld [vmem:[%s5484_s15 + $0x40] sm:$0xff] }
 0x50d   : > { %3040 = vmatpush.bf16.msra.mxu0 %v4151_v26  ;;  %3027 = vmatpush.bf16.msrb.mxu3 %v4143_v32  ;;  %v2723_v26 = vperm.slane %v5399_v3, 2 }
 0x510   : > { %2681 = vmatpush.bf16.msrb.mxu2 %v3818_v18 }
 0x511   : > { %3041 = vmatpush.bf16.msra.mxu0 %v4150_v31  ;;  %3028 = vmatpush.bf16.msrb.mxu3 %v4142_v13 }
 0x514   : > { %2682 = vmatpush.bf16.msrb.mxu2 %v3802_v59 }
 0x515   : > { %3042 = vmatpush.bf16.msra.mxu0 %v4149_v43  ;;  %3029 = vmatpush.bf16.msrb.mxu3 %v4141_v39 }
 0x518   : > { %2683 = vmatpush.bf16.msrb.mxu2 %v3786_v46 }
 0x519   : > { %3043 = vmatpush.bf16.msra.mxu0 %v4148_v29  ;;  %3030 = vmatpush.bf16.msrb.mxu3 %v4140_v47 }
 0x51b   : > { %3760 = vmatmul.msk.bf16.vlgmr.msra.gmra.mxu2 %vm1510_vm4, %v5187_v21  ;;  %3845 = vmatmul.msk.bf16.vlgmr.msra.gmra.mxu3 %vm1510_vm4, %v2562_v6  ;;  %v4125_v21 = vld [vmem:[%s5484_s15 + $0x28] sm:$0xff] }
 0x51c   : > { %3846 = vmatmul.msk.bf16.vlgmr.msrb.gmra.mxu0 %vm1510_vm4, %v2562_v6  ;;  %3003 = vmatpush.bf16.msrb.mxu1 %v4125_v21  ;;  %v2724_v21 = vperm.slane %v5399_v3, 3 }
 0x51d   : > { %3044 = vmatpush.bf16.msra.mxu0 %v4147_v42  ;;  %3014 = vmatpush.bf16.msra.mxu2 %v4135_v50  ;;  %v2722_v42 = vperm.slane %v5399_v3, 1 }
 0x51e   : > { %3031 = vmatpush.bf16.msrb.mxu3 %v4139_v55 }
 0x520   : > { %3004 = vmatpush.bf16.msrb.mxu1 %v4124_v24 }
 0x521   : > { %3045 = vmatpush.bf16.msra.mxu0 %v4146_v27  ;;  %3015 = vmatpush.bf16.msra.mxu2 %v4134_v2 }
 0x522   : > { %3032 = vmatpush.bf16.msrb.mxu3 %v4138_v56 }
 0x524   : > { %3005 = vmatpush.bf16.msrb.mxu1 %v4123_v36 }
 0x525   : > { %3046 = vmatpush.bf16.msra.mxu0 %v4145_v58  ;;  %3016 = vmatpush.bf16.msra.mxu2 %v4133_v62 }
 0x526   : > { %3033 = vmatpush.bf16.msrb.mxu3 %v4137_v0 }
 0x528   : > { %3006 = vmatpush.bf16.msrb.mxu1 %v4122_v37 }
 0x529   : > { %3047 = vmatpush.bf16.msra.mxu0 %v4144_v4  ;;  %3017 = vmatpush.bf16.msra.mxu2 %v4132_v10  ;;  %v4195_v4 = vld [vmem:[%s5485_s16] ss:$0 sm:$0xff] }
 0x52a   : > { %3034 = vmatpush.bf16.msrb.mxu3 %v4136_v7 }
 0x52b   : > { %3844 = vmatmul.msk.bf16.vlgmr.msrb.gmra.mxu2 %vm1510_vm4, %v2562_v6  ;;  %v2721_v6 = vperm.slane %v5399_v3, 0 }
 0x52c   : > { %3007 = vmatpush.bf16.msrb.mxu1 %v4121_v25 }
 0x52d   : > { %3018 = vmatpush.bf16.msra.mxu2 %v4131_v14 }
 0x530   : > { %3008 = vmatpush.bf16.msrb.mxu1 %v4120_v38 }
 0x531   : > { %3019 = vmatpush.bf16.msra.mxu2 %v4130_v17 }
 0x535   : > { %3020 = vmatpush.bf16.msra.mxu2 %v4129_v45 }
 0x539   : > { %3021 = vmatpush.bf16.msra.mxu2 %v4128_v41 }
 0x560   : > { %v2362_v51 = vpop.f32.mrf.mxu1 }
 0x568   : > { %v2364_v28 = vpop.f32.mrf.mxu1 }
 0x569   : > { %v5356_v33 = vpop.f32.mrf.mxu0 }
 0x56e   : > { %v2227_v34 = vpop.f32.mrf.mxu2  ;;  %v5367_v30 = vpop.f32.mrf.mxu3 }
 0x56f   : > { %v2363_v63 = vadd.f32 %v2362_v51, %v2227_v34 }
 0x570   : > { %v2515_v40 = vpop.f32.mrf.mxu1 }
 0x571   : > { %v2268_v35 = vpop.f32.mrf.mxu0  ;;  %v2558_v5 = vadd.f32 %v2515_v40, %v2363_v63 }
 0x576   : > { %v2229_v20 = vpop.f32.mrf.mxu2  ;;  %v2255_v49 = vpop.f32.mrf.mxu3 }
 0x578   : > { %v2517_v48 = vpop.f32.mrf.mxu1 }
 0x579   : > { %v2401_v57 = vpop.f32.mrf.mxu0 }
 0x57a   : > { %v2402_v19 = vadd.f32 %v2401_v57, %v5356_v33 }
 0x57e   : > { %v2240_v60 = vpop.f32.mrf.mxu2  ;;  %v2388_v1 = vpop.f32.mrf.mxu3 }
 0x57f   : > { %v2389_v37 = vadd.f32 %v2388_v1, %v5367_v30 }
 0x580   : > { %v2672_v8 = vpop.f32.mrf.mxu1 }
 0x581   : > { %v2403_v52 = vpop.f32.mrf.mxu0  ;;  %v2715_v61 = vadd.f32 %v2672_v8, %v2558_v5 }
 0x583   : > { %v2729_v9 = vadd.f32 %v2721_v6, %v2715_v61 }
 0x585   : > { %v2733_v53 = vmax.f32 %v2729_v9, 0.0 }
 0x586   : > { %v2242_v11 = vpop.f32.mrf.mxu2  ;;  %v2390_v12 = vpop.f32.mrf.mxu3 }
 0x587   : > { %v2737_v54 = vpack.c.bf16 %v2733_v53, %v2733_v53 }
 0x588   : > { %v2674_v15 = vpop.f32.mrf.mxu1 }
 0x589   : > { %v2554_v16 = vpop.f32.mrf.mxu0  ;;  %3009 = vmatmul.bf16.vlgmr.msrb.gmra.mxu1 %v2737_v54 }
 0x58a   : > { %v2561_v23 = vadd.f32 %v2554_v16, %v2402_v19 }
 0x58e   : > { %v2375_v18 = vpop.f32.mrf.mxu2  ;;  %v2541_v44 = vpop.f32.mrf.mxu3 }
 0x58f   : > { %v2560_v25 = vadd.f32 %v2541_v44, %v2389_v37  ;;  %v2376_v35 = vadd.f32 %v2375_v18, %v2240_v60 }
 0x591   : > { %v2556_v59 = vpop.f32.mrf.mxu0 }
 0x596   : > { %v2377_v46 = vpop.f32.mrf.mxu2  ;;  %v2543_v22 = vpop.f32.mrf.mxu3 }
 0x599   : > { %v2711_v24 = vpop.f32.mrf.mxu0 }
 0x59a   : > { %v2718_v36 = vadd.f32 %v2711_v24, %v2561_v23 }
 0x59c   : > { %v2732_v51 = vadd.f32 %v2724_v21, %v2718_v36 }
 0x59e   : > { %v2736_v38 = vmax.f32 %v2732_v51, 0.0  ;;  %v2528_v31 = vpop.f32.mrf.mxu2  ;;  %v2698_v32 = vpop.f32.mrf.mxu3 }
 0x59f   : > { %v2717_v28 = vadd.f32 %v2698_v32, %v2560_v25  ;;  %v2559_v30 = vadd.f32 %v2528_v31, %v2376_v35 }
 0x5a0   : > { %v2740_v43 = vpack.c.bf16 %v2736_v38, %v2736_v38 }
 0x5a1   : > { %v2731_v13 = vadd.f32 %v2723_v26, %v2717_v28  ;;  %v2713_v33 = vpop.f32.mrf.mxu0 }
 0x5a2   : > { %3048 = vmatmul.bf16.vlgmr.msra.gmra.mxu0 %v2740_v43 }
 0x5a3   : > { %v2735_v29 = vmax.f32 %v2731_v13, 0.0 }
 0x5a5   : > { %v2739_v34 = vpack.c.bf16 %v2735_v29, %v2735_v29 }
 0x5a6   : > { %v2530_v39 = vpop.f32.mrf.mxu2  ;;  %v2700_v40 = vpop.f32.mrf.mxu3 }
 0x5a7   : > { %3035 = vmatmul.bf16.vlgmr.msrb.gmra.mxu3 %v2739_v34 }
 0x5ae   : > { %v2685_v47 = vpop.f32.mrf.mxu2 }
 0x5af   : > { %v2716_v27 = vadd.f32 %v2685_v47, %v2559_v30 }
 0x5b1   : > { %v2730_v20 = vadd.f32 %v2722_v42, %v2716_v27 }
 0x5b3   : > { %v2734_v49 = vmax.f32 %v2730_v20, 0.0 }
 0x5b5   : > { %v2738_v50 = vpack.c.bf16 %v2734_v49, %v2734_v49 }
 0x5b6   : > { %v2687_v55 = vpop.f32.mrf.mxu2 }
 0x5b7   : > { %3022 = vmatmul.bf16.vlgmr.msra.gmra.mxu2 %v2738_v50 }
 0x606   : > { %v3010_v48 = vpop.f32.mrf.mxu1 }
 0x607   : > { %v3011_v3 = vadd.f32 %v4195_v4, %v3010_v48 }
 0x60e   : > { %v3012_v57 = vpop.f32.mrf.mxu1 }
 0x61f   : > { %v3049_v58 = vpop.f32.mrf.mxu0 }
 0x627   : > { %v3051_v63 = vpop.f32.mrf.mxu0 }
 0x62a   : > { %v3036_v2 = vpop.f32.mrf.mxu3 }
 0x632   : > { %v3038_v56 = vpop.f32.mrf.mxu3 }
 0x63a   : > { %v3023_v60 = vpop.f32.mrf.mxu2 }
 0x63b   : > { %v3024_v1 = vadd.f32 %v3023_v60, %v3011_v3 }
 0x63d   : > { %v3037_v5 = vadd.f32 %v3036_v2, %v3024_v1 }
 0x63f   : > { %v3050_v6 = vadd.f32 %v3049_v58, %v3037_v5 }
 0x641   : > { %3053 = vst [vmem:[%s541_s0] sm:$0xff] %v3050_v6 }
 0x642   : > { %v3025_v62 = vpop.f32.mrf.mxu2 }
 0x643   : > { %4223 = shalt.err (!%p4220_p3)
}
 0x644   : > { %4153 = dma.vmem_to_hbm [thread:$0]  (%p4389_p5), %s3068_s20, 128, %s3070_s21, %s3055_s22  }
 0x645 PF: > { %s5514_s24 = sld [smem:[#allocation8_spill]] }
 0x646   : > { %s5515_s0 = sld [smem:[#allocation6_spill]] }
 0x64b   : > { %p4159_p4 = scmp.ge.s32.totalorder %s5514_s24, 2 }
 0x64c   : > { %s3081_s3 = sand.u32 1, %s5515_s0  }
 0x64d   : > { %p4156_p7 = pnand %p4159_p4, %p4393_p6  ;;  %s3082_s29 = scalar_lea.sflag [#allocation4], %s3081_s3 }
 0x64f   : > { %p4157_p8 = pneg %p4156_p7 }
 0x651   : > { %4241 = dma.done.wait (%p4157_p8), %s3082_s29, 128  }
 0x652   : > { %4243 = vsyncadd (%p4157_p8), %s3082_s29, 4294967168  ;;  %s5517_s27 = sld [smem:[#allocation9_spill]]  ;;  %s5520_s24 = smov %s4250_s25 }
 0x653   : > { %s5518_s28 = sld [smem:[#allocation7_spill]] }
 0x654   : > { %s5519_s26 = sld [smem:[#allocation10_spill]] }
 0x658   : > { %p27_p9 = scmp.ge.s32.totalorder %s5517_s27, 4  }
 0x659   : > { %s5521_s25 = smov %s5518_s28 }
 0x65a   :  { %29 = sbr.rel (!%p27_p9) target bundleno = 8 (0x8), region = 130 }
 0x65f   :  { %3088 = vsyncpa [#allocation4], 1 }
 0x660   :  { %3090 = vsyncpa [#allocation4 + $0x1], 1 }

</bundles_post_ra>
